<compile_context>
chip_gen: v5e
topology: v5e:2x2
jax: 0.10.0
libtpu: 0.0.40
codegen_flags: <defaults>
</compile_context>

<pallas_src>
import functools

import jax
import jax.numpy as jnp
from jax import lax
from jax.experimental import pallas as pl
from jax.experimental.pallas import tpu as pltpu

THRESHOLD = 0.5
NEG_POS_RATIO = 3
ALPHA = 1.0
_PART_LANES = 128   # lane-dense partial-sum row: lanes 0..2 = [n_pos, pos-CE, sl1]


# --------------------------------------------------------------------------
# Fused kernel: matching + target encoding + per-prior CE / smooth-L1
# --------------------------------------------------------------------------
def _multibox_kernel(gt_ref, pri_ref, plocs_ref, scores_ref,
                     confneg_ref, part_ref, *, threshold):
    # gt_ref      : (n_obj, 6)            cols = [x0, y0, x1, y1, label, area_b]
    # pri_ref     : (11, n_priors)        rows = [px0 py0 px1 py1 pcx pcy
    #                                             10/pw 10/ph log_pw log_ph area_p]
    # plocs_ref   : (4, n_priors)         prior axis on lanes
    # scores_ref  : (n_classes, n_priors)
    # confneg_ref : (1, n_priors)         CE at negatives (0 at positives)
    # part_ref    : (1, _PART_LANES)      lanes 0..2 = [n_pos, sum pos CE, sum sl1]
    n_obj = gt_ref.shape[0]
    n_priors = pri_ref.shape[1]
    n_classes = scores_ref.shape[0]

    # Prior rows: (1, n_priors) each -- broadcast down sublanes.
    px0 = pri_ref[0:1, :]; py0 = pri_ref[1:2, :]
    px1 = pri_ref[2:3, :]; py1 = pri_ref[3:4, :]
    pcx = pri_ref[4:5, :]; pcy = pri_ref[5:6, :]
    inv_w = pri_ref[6:7, :]; inv_h = pri_ref[7:8, :]
    log_pw = pri_ref[8:9, :]; log_ph = pri_ref[9:10, :]
    area_p = pri_ref[10:11, :]

    # Ground-truth columns: (n_obj, 1) each -- broadcast across lanes.
    g = gt_ref[...]
    bx0 = g[:, 0:1]; by0 = g[:, 1:2]
    bx1 = g[:, 2:3]; by1 = g[:, 3:4]
    lab = g[:, 4:5]; area_b = g[:, 5:6]

    iota_o = lax.broadcasted_iota(jnp.int32, (n_obj, n_priors), 0)
    iota_p = lax.broadcasted_iota(jnp.int32, (n_obj, n_priors), 1)
    iota_c = lax.broadcasted_iota(jnp.int32, (n_classes, n_priors), 0)

    # --- Jaccard overlap (n_obj, n_priors), prior axis lane-dense -------------
    iw = jnp.maximum(jnp.minimum(px1, bx1) - jnp.maximum(px0, bx0), 0.0)
    ih = jnp.maximum(jnp.minimum(py1, by1) - jnp.maximum(py0, by0), 0.0)
    inter = iw * ih
    union = jnp.maximum(area_p + area_b - inter, 1e-12)   # 0/0 guard
    # Exact divide kept on purpose: an approx reciprocal could flip priors
    # sitting exactly at the 0.5 IoU threshold.
    # TODO(synk): padded GT boxes are only NaN-guarded, not excluded from
    # matching; add an object-validity mask if real batches pad n_obj.
    iou = inter / union

    # best object for each prior (first-occurrence argmax, sublane reduce)
    ovl_pp = jnp.max(iou, axis=0, keepdims=True)                        # (1, n_priors)
    obj_pp = jnp.min(jnp.where(iou == ovl_pp, iota_o, n_obj),
                     axis=0, keepdims=True)                             # (1, n_priors)

    # best prior for each object (first-occurrence argmax, lane reduce)
    ovl_po = jnp.max(iou, axis=1, keepdims=True)                        # (n_obj, 1)
    pri_po = jnp.min(jnp.where(iou == ovl_po, iota_p, n_priors),
                     axis=1, keepdims=True)                             # (n_obj, 1)

    # force-assign each object's best prior to that object (last obj wins,
    # matching the sequential assignment in the PyTorch reference)
    match = iota_p == pri_po                                            # (n_obj, n_priors)
    j_forced = jnp.max(jnp.where(match, iota_o, -1), axis=0, keepdims=True)
    forced = j_forced >= 0
    obj_pp = jnp.where(forced, j_forced, obj_pp)
    ovl_pp = jnp.where(forced, 1.0, ovl_pp)

    onehot = iota_o == obj_pp                                           # (n_obj, n_priors)

    # one-hot gathers = tiny sublane reductions (kept on the VPU on purpose)
    def gather(col):                                 # (n_obj, 1) -> (1, n_priors)
        return jnp.sum(jnp.where(onehot, col, 0.0), axis=0, keepdims=True)

    lbl = gather(lab)
    gx0 = gather(bx0); gy0 = gather(by0)
    gx1 = gather(bx1); gy1 = gather(by1)

    tcls = jnp.where(ovl_pp < threshold, 0.0, lbl)                      # (1, n_priors)
    tcls_i = tcls.astype(jnp.int32)
    pos = tcls_i != 0

    # --- gcxgcy encoding (precomputed 10/pw, log pw live in pri_ref) ----------
    cx = (gx0 + gx1) * 0.5
    cy = (gy0 + gy1) * 0.5
    w = jnp.maximum(gx1 - gx0, 1e-12)    # log(0) guard for degenerate boxes
    h = jnp.maximum(gy1 - gy0, 1e-12)
    gcx = (cx - pcx) * inv_w
    gcy = (cy - pcy) * inv_h
    gw = (jnp.log(w) - log_pw) * 5.0
    gh = (jnp.log(h) - log_ph) * 5.0
    tgt = jnp.concatenate([gcx, gcy, gw, gh], axis=0)                   # (4, n_priors)

    # --- smooth-L1 (beta=1), masked to positives, one lane-dense tile ---------
    d = plocs_ref[...] - tgt
    ad = jnp.abs(d)
    sl1 = jnp.where(ad < 1.0, 0.5 * d * d, ad - 0.5)
    sl1 = jnp.where(pos, sl1, 0.0)                                      # (4, n_priors)

    # --- per-prior cross entropy (log-softmax over class sublanes) ------------
    s = scores_ref[...]                                                 # (n_cls, n_priors)
    m = jnp.max(s, axis=0, keepdims=True)
    z = s - m
    lse = jnp.log(jnp.sum(jnp.exp(z), axis=0, keepdims=True))           # (1, n_priors)
    z_t = jnp.sum(jnp.where(iota_c == tcls_i, z, 0.0), axis=0, keepdims=True)
    ce = lse - z_t                                                      # (1, n_priors)

    conf_pos = jnp.where(pos, ce, 0.0)
    conf_neg = jnp.where(pos, 0.0, ce)

    # --- outputs ---------------------------------------------------------------
    confneg_ref[...] = conf_neg                          # lane-dense unmasked store

    npos_11 = jnp.sum(pos.astype(jnp.float32), axis=1, keepdims=True)   # (1, 1)
    cpos_11 = jnp.sum(conf_pos, axis=1, keepdims=True)                  # (1, 1)
    l1_11 = jnp.sum(jnp.sum(sl1, axis=1, keepdims=True), axis=0, keepdims=True)
    lane = lax.broadcasted_iota(jnp.int32, (1, _PART_LANES), 1)
    part_ref[...] = (jnp.where(lane == 0, npos_11, 0.0)
                     + jnp.where(lane == 1, cpos_11, 0.0)
                     + jnp.where(lane == 2, l1_11, 0.0))


def _fused_multibox_call(gt_cm, priors_packed, plocs_t, scores_t, *, threshold):
    B, n_classes, n_priors = scores_t.shape
    n_obj = gt_cm.shape[1]
    ncol = priors_packed.shape[0]

    kernel = functools.partial(_multibox_kernel, threshold=threshold)
    return pl.pallas_call(
        kernel,
        out_shape=(jax.ShapeDtypeStruct((B, 1, n_priors), jnp.float32),
                   jax.ShapeDtypeStruct((B, 1, _PART_LANES), jnp.float32)),
        grid_spec=pltpu.PrefetchScalarGridSpec(
            num_scalar_prefetch=0,
            grid=(B,),                       # one image per grid step
            in_specs=[
                pl.BlockSpec((None, n_obj, 6), lambda i: (i, 0, 0)),
                pl.BlockSpec((ncol, n_priors), lambda i: (0, 0)),
                pl.BlockSpec((None, 4, n_priors), lambda i: (i, 0, 0)),
                pl.BlockSpec((None, n_classes, n_priors), lambda i: (i, 0, 0)),
            ],
            out_specs=[
                pl.BlockSpec((None, 1, n_priors), lambda i: (i, 0, 0)),
                pl.BlockSpec((None, 1, _PART_LANES), lambda i: (i, 0, 0)),
            ],
        ),
        compiler_params=pltpu.CompilerParams(
            dimension_semantics=("parallel",)),
    )(gt_cm, priors_packed, plocs_t, scores_t)


# --------------------------------------------------------------------------
# Full MultiBoxLoss forward
# --------------------------------------------------------------------------
def multibox_loss(predicted_locs, predicted_scores, boxes_xy, labels, priors_cxcy,
                  *, threshold=THRESHOLD, neg_pos_ratio=NEG_POS_RATIO, alpha=ALPHA):
    # predicted_locs  : (B, n_priors, 4)       float32
    # predicted_scores: (B, n_priors, n_cls)   float32
    # boxes_xy        : (B, n_obj, 4)          float32, boundary coords
    # labels          : (B, n_obj)             int (0 = background is excluded)
    # priors_cxcy     : (n_priors, 4)          float32, center-size coords
    B, n_priors, _ = predicted_locs.shape

    predicted_locs = predicted_locs.astype(jnp.float32)
    predicted_scores = predicted_scores.astype(jnp.float32)
    boxes_xy = boxes_xy.astype(jnp.float32)
    priors_cxcy = priors_cxcy.astype(jnp.float32)

    # Packed prior constants with the prior axis on lanes: (11, n_priors)
    pxy0 = priors_cxcy[:, :2] - priors_cxcy[:, 2:] * 0.5
    pxy1 = priors_cxcy[:, :2] + priors_cxcy[:, 2:] * 0.5
    area_p = (pxy1[:, 0:1] - pxy0[:, 0:1]) * (pxy1[:, 1:2] - pxy0[:, 1:2])
    inv_wh = 10.0 / priors_cxcy[:, 2:4]
    log_wh = jnp.log(priors_cxcy[:, 2:4])
    priors_packed = jnp.concatenate(
        [pxy0, pxy1, priors_cxcy[:, :2], inv_wh, log_wh, area_p], axis=1).T

    # Packed per-image ground truth: (B, n_obj, 6) = [x0 y0 x1 y1 label area]
    area_b = ((boxes_xy[:, :, 2] - boxes_xy[:, :, 0])
              * (boxes_xy[:, :, 3] - boxes_xy[:, :, 1]))
    gt_cm = jnp.concatenate(
        [boxes_xy, labels.astype(jnp.float32)[:, :, None], area_b[:, :, None]],
        axis=2)

    # One-time XLA relayout so the prior axis is the lane (last) dim.
    plocs_t = jnp.transpose(predicted_locs, (0, 2, 1))     # (B, 4, n_priors)
    scores_t = jnp.transpose(predicted_scores, (0, 2, 1))  # (B, n_cls, n_priors)

    conf_neg3, partials = _fused_multibox_call(
        gt_cm, priors_packed, plocs_t, scores_t, threshold=threshold)

    conf_neg = conf_neg3[:, 0, :]                           # (B, n_priors)
    n_pos = partials[:, 0, 0]                               # (B,) float (exact ints)
    conf_pos_sum = jnp.sum(partials[:, 0, 1])
    l1_sum = jnp.sum(partials[:, 0, 2])
    total_pos = jnp.maximum(jnp.sum(n_pos), 1.0)            # guard 0 positives

    # SmoothL1Loss(reduction='mean') over the (num_pos, 4) selected tensor
    loc_loss = l1_sum / (total_pos * 4.0)

    # Hard-negative mining.
    # TODO(synk): descending sort stays in XLA glue; a bounded lax.top_k would
    #             be cheaper at 8732 priors but needs a safe static bound on
    #             neg_pos_ratio * n_pos.
    conf_neg_sorted = -jnp.sort(-conf_neg, axis=1)
    ranks = jnp.arange(n_priors, dtype=jnp.float32)[None, :]
    hard = ranks < (neg_pos_ratio * n_pos)[:, None]
    conf_hard_sum = jnp.sum(jnp.where(hard, conf_neg_sorted, 0.0))

    conf_loss = (conf_hard_sum + conf_pos_sum) / total_pos
    return conf_loss + alpha * loc_loss


# --------------------------------------------------------------------------
# Pure-JAX reference (same tie-breaking rules) for verification
# --------------------------------------------------------------------------
def multibox_loss_reference(predicted_locs, predicted_scores, boxes_xy, labels,
                            priors_cxcy, threshold=THRESHOLD,
                            neg_pos_ratio=NEG_POS_RATIO, alpha=ALPHA):
    B, n_priors, n_classes = predicted_scores.shape
    n_obj = boxes_xy.shape[1]
    priors_xy = jnp.concatenate(
        [priors_cxcy[:, :2] - priors_cxcy[:, 2:] / 2.0,
         priors_cxcy[:, :2] + priors_cxcy[:, 2:] / 2.0], 1)

    def match_one(b, lab):
        lo = jnp.maximum(b[:, None, :2], priors_xy[None, :, :2])
        hi = jnp.minimum(b[:, None, 2:], priors_xy[None, :, 2:])
        wh = jnp.maximum(hi - lo, 0.0)
        inter = wh[..., 0] * wh[..., 1]
        area_b = (b[:, 2] - b[:, 0]) * (b[:, 3] - b[:, 1])
        area_p = (priors_xy[:, 2] - priors_xy[:, 0]) * (priors_xy[:, 3] - priors_xy[:, 1])
        iou = inter / (area_b[:, None] + area_p[None, :] - inter)

        ovl_pp = jnp.max(iou, 0)
        obj_pp = jnp.argmax(iou, 0)
        pri_po = jnp.argmax(iou, 1)
        forced = jnp.arange(n_priors)[None, :] == pri_po[:, None]
        j_forced = jnp.max(jnp.where(forced, jnp.arange(n_obj)[:, None], -1), axis=0)
        has = j_forced >= 0
        obj_pp = jnp.where(has, j_forced, obj_pp)
        ovl_pp = jnp.where(has, 1.0, ovl_pp)
        lbl = jnp.where(ovl_pp < threshold, 0, lab[obj_pp])
        gb = b[obj_pp]
        c = jnp.concatenate([(gb[:, :2] + gb[:, 2:]) / 2.0, gb[:, 2:] - gb[:, :2]], 1)
        g = jnp.concatenate([(c[:, :2] - priors_cxcy[:, :2]) / (priors_cxcy[:, 2:] / 10.0),
                             jnp.log(c[:, 2:] / priors_cxcy[:, 2:]) * 5.0], 1)
        return g, lbl

    true_locs, true_classes = jax.vmap(match_one)(boxes_xy, labels.astype(jnp.int32))
    pos = true_classes != 0
    n_pos = jnp.sum(pos, axis=1)
    total_pos = jnp.sum(n_pos).astype(jnp.float32)

    d = predicted_locs - true_locs
    ad = jnp.abs(d)
    sl1 = jnp.where(ad < 1.0, 0.5 * d * d, ad - 0.5)
    loc_loss = jnp.sum(jnp.where(pos[..., None], sl1, 0.0)) / (total_pos * 4.0)

    logsm = jax.nn.log_softmax(predicted_scores, axis=-1)
    ce = -jnp.take_along_axis(logsm, true_classes[..., None], axis=-1)[..., 0]
    conf_pos = jnp.sum(jnp.where(pos, ce, 0.0))
    conf_neg = jnp.where(pos, 0.0, ce)
    conf_neg_sorted = -jnp.sort(-conf_neg, axis=1)
    hard = jnp.arange(n_priors)[None, :] < (neg_pos_ratio * n_pos)[:, None]
    conf_hard = jnp.sum(jnp.where(hard, conf_neg_sorted, 0.0))
    conf_loss = (conf_hard + conf_pos) / total_pos
    return conf_loss + alpha * loc_loss


if __name__ == "__main__":
    B, n_obj, n_classes = 2, 4, 8
    grid_sz = 16
    n_priors = grid_sz * grid_sz  # 256

    # deterministic priors: 16x16 grid of centers, fixed 0.2 size (cx, cy, w, h)
    cs = (jnp.arange(grid_sz, dtype=jnp.float32) + 0.5) / grid_sz
    cx, cy = jnp.meshgrid(cs, cs, indexing="ij")
    priors_cxcy = jnp.stack(
        [cx.reshape(-1), cy.reshape(-1),
         jnp.full((n_priors,), 0.2, jnp.float32),
         jnp.full((n_priors,), 0.2, jnp.float32)], axis=1)

    key = jax.random.PRNGKey(0)
    k1, k2, k3, k4, k5, k6, k7 = jax.random.split(key, 7)
    bcx = jax.random.uniform(k1, (B, n_obj), minval=0.2, maxval=0.8)
    bcy = jax.random.uniform(k2, (B, n_obj), minval=0.2, maxval=0.8)
    bw = jax.random.uniform(k3, (B, n_obj), minval=0.1, maxval=0.3)
    bh = jax.random.uniform(k4, (B, n_obj), minval=0.1, maxval=0.3)
    boxes_xy = jnp.stack(
        [bcx - bw / 2, bcy - bh / 2, bcx + bw / 2, bcy + bh / 2], axis=-1)
    labels = jax.random.randint(k5, (B, n_obj), 1, n_classes)

    predicted_locs = jax.random.normal(k6, (B, n_priors, 4), dtype=jnp.float32)
    predicted_scores = jax.random.normal(k7, (B, n_priors, n_classes), dtype=jnp.float32)

    loss = multibox_loss(predicted_locs, predicted_scores, boxes_xy, labels, priors_cxcy)
    loss = jax.block_until_ready(loss)

    ref = multibox_loss_reference(predicted_locs, predicted_scores, boxes_xy,
                                  labels, priors_cxcy)
    ref = jax.block_until_ready(ref)

    assert bool(jnp.isfinite(loss)), f"loss not finite: {loss}"
    assert abs(float(loss) - float(ref)) <= 1e-3 * max(1.0, abs(float(ref))), (
        float(loss), float(ref))
    print("KERNEL_OK")
</pallas_src>

<mosaic_0001>
module attributes {stable_mosaic.version = 11 : i64} {
  func.func @_multibox_kernel(%arg0: i32, %arg1: memref<1x4x6xf32, #tpu.memory_space<vmem>>, %arg2: memref<11x256xf32, #tpu.memory_space<vmem>>, %arg3: memref<1x4x256xf32, #tpu.memory_space<vmem>>, %arg4: memref<1x8x256xf32, #tpu.memory_space<vmem>>, %arg5: memref<1x1x256xf32, #tpu.memory_space<vmem>>, %arg6: memref<1x1x128xf32, #tpu.memory_space<vmem>>) attributes {dimension_semantics = [#tpu.dimension_semantics<parallel>], iteration_bounds = array<i64: 2>, scalar_prefetch = 0 : i64, scratch_operands = 0 : i64, tpu.core_type = #tpu.core_type<tc>, window_params = [{transform_indices = @transform_0, window_bounds = array<i64: 1, 4, 6>}, {pipeline_mode = #tpu.pipeline_mode<synchronous>, transform_indices = @transform_1, window_bounds = array<i64: 11, 256>}, {transform_indices = @transform_2, window_bounds = array<i64: 1, 4, 256>}, {transform_indices = @transform_3, window_bounds = array<i64: 1, 8, 256>}, {transform_indices = @transform_4, window_bounds = array<i64: 1, 1, 256>}, {transform_indices = @transform_5, window_bounds = array<i64: 1, 1, 128>}]} {
    %c0 = arith.constant 0 : index
    %c0_0 = arith.constant 0 : index
    %0 = vector.load %arg2[%c0, %c0_0] : memref<11x256xf32, #tpu.memory_space<vmem>>, vector<1x256xf32>
    %c1 = arith.constant 1 : index
    %c0_1 = arith.constant 0 : index
    %1 = vector.load %arg2[%c1, %c0_1] : memref<11x256xf32, #tpu.memory_space<vmem>>, vector<1x256xf32>
    %c2 = arith.constant 2 : index
    %c0_2 = arith.constant 0 : index
    %2 = vector.load %arg2[%c2, %c0_2] : memref<11x256xf32, #tpu.memory_space<vmem>>, vector<1x256xf32>
    %c3 = arith.constant 3 : index
    %c0_3 = arith.constant 0 : index
    %3 = vector.load %arg2[%c3, %c0_3] : memref<11x256xf32, #tpu.memory_space<vmem>>, vector<1x256xf32>
    %c4 = arith.constant 4 : index
    %c0_4 = arith.constant 0 : index
    %4 = vector.load %arg2[%c4, %c0_4] : memref<11x256xf32, #tpu.memory_space<vmem>>, vector<1x256xf32>
    %c5 = arith.constant 5 : index
    %c0_5 = arith.constant 0 : index
    %5 = vector.load %arg2[%c5, %c0_5] : memref<11x256xf32, #tpu.memory_space<vmem>>, vector<1x256xf32>
    %c6 = arith.constant 6 : index
    %c0_6 = arith.constant 0 : index
    %6 = vector.load %arg2[%c6, %c0_6] : memref<11x256xf32, #tpu.memory_space<vmem>>, vector<1x256xf32>
    %c7 = arith.constant 7 : index
    %c0_7 = arith.constant 0 : index
    %7 = vector.load %arg2[%c7, %c0_7] : memref<11x256xf32, #tpu.memory_space<vmem>>, vector<1x256xf32>
    %c8 = arith.constant 8 : index
    %c0_8 = arith.constant 0 : index
    %8 = vector.load %arg2[%c8, %c0_8] : memref<11x256xf32, #tpu.memory_space<vmem>>, vector<1x256xf32>
    %c9 = arith.constant 9 : index
    %c0_9 = arith.constant 0 : index
    %9 = vector.load %arg2[%c9, %c0_9] : memref<11x256xf32, #tpu.memory_space<vmem>>, vector<1x256xf32>
    %c10 = arith.constant 10 : index
    %c0_10 = arith.constant 0 : index
    %10 = vector.load %arg2[%c10, %c0_10] : memref<11x256xf32, #tpu.memory_space<vmem>>, vector<1x256xf32>
    %c0_11 = arith.constant 0 : index
    %c0_12 = arith.constant 0 : index
    %c0_13 = arith.constant 0 : index
    %11 = vector.load %arg1[%c0_11, %c0_12, %c0_13] : memref<1x4x6xf32, #tpu.memory_space<vmem>>, vector<1x4x6xf32>
    %12 = vector.shape_cast %11 : vector<1x4x6xf32> to vector<4x6xf32>
    %13 = vector.extract_strided_slice %12 {offsets = [0, 0], sizes = [4, 1], strides = [1, 1]} : vector<4x6xf32> to vector<4x1xf32>
    %14 = vector.extract_strided_slice %12 {offsets = [0, 1], sizes = [4, 1], strides = [1, 1]} : vector<4x6xf32> to vector<4x1xf32>
    %15 = vector.extract_strided_slice %12 {offsets = [0, 2], sizes = [4, 1], strides = [1, 1]} : vector<4x6xf32> to vector<4x1xf32>
    %16 = vector.extract_strided_slice %12 {offsets = [0, 3], sizes = [4, 1], strides = [1, 1]} : vector<4x6xf32> to vector<4x1xf32>
    %17 = vector.extract_strided_slice %12 {offsets = [0, 4], sizes = [4, 1], strides = [1, 1]} : vector<4x6xf32> to vector<4x1xf32>
    %18 = vector.extract_strided_slice %12 {offsets = [0, 5], sizes = [4, 1], strides = [1, 1]} : vector<4x6xf32> to vector<4x1xf32>
    %19 = tpu.iota {dimensions = array<i32: 0>} : vector<4x256xi32>
    %20 = tpu.iota {dimensions = array<i32: 1>} : vector<4x256xi32>
    %21 = tpu.iota {dimensions = array<i32: 0>} : vector<8x256xi32>
    %22 = vector.broadcast %2 : vector<1x256xf32> to vector<4x256xf32>
    %23 = vector.broadcast %15 : vector<4x1xf32> to vector<4x256xf32>
    %24 = arith.minimumf %22, %23 : vector<4x256xf32>
    %25 = vector.broadcast %0 : vector<1x256xf32> to vector<4x256xf32>
    %26 = vector.broadcast %13 : vector<4x1xf32> to vector<4x256xf32>
    %27 = arith.maximumf %25, %26 : vector<4x256xf32>
    %28 = arith.subf %24, %27 : vector<4x256xf32>
    %cst = arith.constant 0.000000e+00 : f32
    %29 = vector.broadcast %cst : f32 to vector<4x256xf32>
    %30 = arith.maximumf %28, %29 : vector<4x256xf32>
    %31 = vector.broadcast %3 : vector<1x256xf32> to vector<4x256xf32>
    %32 = vector.broadcast %16 : vector<4x1xf32> to vector<4x256xf32>
    %33 = arith.minimumf %31, %32 : vector<4x256xf32>
    %34 = vector.broadcast %1 : vector<1x256xf32> to vector<4x256xf32>
    %35 = vector.broadcast %14 : vector<4x1xf32> to vector<4x256xf32>
    %36 = arith.maximumf %34, %35 : vector<4x256xf32>
    %37 = arith.subf %33, %36 : vector<4x256xf32>
    %cst_14 = arith.constant 0.000000e+00 : f32
    %38 = vector.broadcast %cst_14 : f32 to vector<4x256xf32>
    %39 = arith.maximumf %37, %38 : vector<4x256xf32>
    %40 = arith.mulf %30, %39 : vector<4x256xf32>
    %41 = vector.broadcast %10 : vector<1x256xf32> to vector<4x256xf32>
    %42 = vector.broadcast %18 : vector<4x1xf32> to vector<4x256xf32>
    %43 = arith.addf %41, %42 : vector<4x256xf32>
    %44 = arith.subf %43, %40 : vector<4x256xf32>
    %cst_15 = arith.constant 9.99999996E-13 : f32
    %45 = vector.broadcast %cst_15 : f32 to vector<4x256xf32>
    %46 = arith.maximumf %44, %45 : vector<4x256xf32>
    %47 = arith.divf %40, %46 : vector<4x256xf32>
    %cst_16 = arith.constant dense<0xFF800000> : vector<256xf32>
    %48 = vector.multi_reduction <maximumf>, %47, %cst_16 [0] : vector<4x256xf32> to vector<256xf32>
    %49 = vector.shape_cast %48 : vector<256xf32> to vector<1x256xf32>
    %50 = vector.broadcast %49 : vector<1x256xf32> to vector<4x256xf32>
    %51 = arith.cmpf oeq, %47, %50 : vector<4x256xf32>
    %c4_i32 = arith.constant 4 : i32
    %52 = vector.broadcast %c4_i32 : i32 to vector<4x256xi32>
    %53 = arith.select %51, %19, %52 : vector<4x256xi1>, vector<4x256xi32>
    %cst_17 = arith.constant dense<2147483647> : vector<256xi32>
    %54 = vector.multi_reduction <minsi>, %53, %cst_17 [0] : vector<4x256xi32> to vector<256xi32>
    %55 = vector.shape_cast %54 : vector<256xi32> to vector<1x256xi32>
    %cst_18 = arith.constant dense<0xFF800000> : vector<4xf32>
    %56 = vector.multi_reduction <maximumf>, %47, %cst_18 [1] : vector<4x256xf32> to vector<4xf32>
    %57 = vector.shape_cast %56 : vector<4xf32> to vector<4x1xf32>
    %58 = vector.broadcast %57 : vector<4x1xf32> to vector<4x256xf32>
    %59 = arith.cmpf oeq, %47, %58 : vector<4x256xf32>
    %c256_i32 = arith.constant 256 : i32
    %60 = vector.broadcast %c256_i32 : i32 to vector<4x256xi32>
    %61 = arith.select %59, %20, %60 : vector<4x256xi1>, vector<4x256xi32>
    %cst_19 = arith.constant dense<2147483647> : vector<4xi32>
    %62 = vector.multi_reduction <minsi>, %61, %cst_19 [1] : vector<4x256xi32> to vector<4xi32>
    %63 = vector.shape_cast %62 : vector<4xi32> to vector<4x1xi32>
    %64 = vector.broadcast %63 : vector<4x1xi32> to vector<4x256xi32>
    %65 = arith.cmpi eq, %20, %64 : vector<4x256xi32>
    %c-1_i32 = arith.constant -1 : i32
    %66 = vector.broadcast %c-1_i32 : i32 to vector<4x256xi32>
    %67 = arith.select %65, %19, %66 : vector<4x256xi1>, vector<4x256xi32>
    %cst_20 = arith.constant dense<-2147483648> : vector<256xi32>
    %68 = vector.multi_reduction <maxsi>, %67, %cst_20 [0] : vector<4x256xi32> to vector<256xi32>
    %69 = vector.shape_cast %68 : vector<256xi32> to vector<1x256xi32>
    %c0_i32 = arith.constant 0 : i32
    %70 = vector.broadcast %c0_i32 : i32 to vector<1x256xi32>
    %71 = arith.cmpi sge, %69, %70 : vector<1x256xi32>
    %72 = arith.select %71, %69, %55 : vector<1x256xi1>, vector<1x256xi32>
    %cst_21 = arith.constant 1.000000e+00 : f32
    %73 = vector.broadcast %cst_21 : f32 to vector<1x256xf32>
    %74 = arith.select %71, %73, %49 : vector<1x256xi1>, vector<1x256xf32>
    %75 = vector.broadcast %72 : vector<1x256xi32> to vector<4x256xi32>
    %76 = arith.cmpi eq, %19, %75 : vector<4x256xi32>
    %cst_22 = arith.constant 0.000000e+00 : f32
    %77 = vector.shape_cast %17 : vector<4x1xf32> to vector<4x1xf32>
    %78 = vector.broadcast %77 : vector<4x1xf32> to vector<4x256xf32>
    %79 = vector.broadcast %cst_22 : f32 to vector<4x256xf32>
    %80 = arith.select %76, %78, %79 : vector<4x256xi1>, vector<4x256xf32>
    %cst_23 = arith.constant dense<0.000000e+00> : vector<256xf32>
    %81 = vector.multi_reduction <add>, %80, %cst_23 [0] : vector<4x256xf32> to vector<256xf32>
    %82 = vector.shape_cast %81 : vector<256xf32> to vector<1x256xf32>
    %cst_24 = arith.constant 0.000000e+00 : f32
    %83 = vector.shape_cast %13 : vector<4x1xf32> to vector<4x1xf32>
    %84 = vector.broadcast %83 : vector<4x1xf32> to vector<4x256xf32>
    %85 = vector.broadcast %cst_24 : f32 to vector<4x256xf32>
    %86 = arith.select %76, %84, %85 : vector<4x256xi1>, vector<4x256xf32>
    %cst_25 = arith.constant dense<0.000000e+00> : vector<256xf32>
    %87 = vector.multi_reduction <add>, %86, %cst_25 [0] : vector<4x256xf32> to vector<256xf32>
    %88 = vector.shape_cast %87 : vector<256xf32> to vector<1x256xf32>
    %cst_26 = arith.constant 0.000000e+00 : f32
    %89 = vector.shape_cast %14 : vector<4x1xf32> to vector<4x1xf32>
    %90 = vector.broadcast %89 : vector<4x1xf32> to vector<4x256xf32>
    %91 = vector.broadcast %cst_26 : f32 to vector<4x256xf32>
    %92 = arith.select %76, %90, %91 : vector<4x256xi1>, vector<4x256xf32>
    %cst_27 = arith.constant dense<0.000000e+00> : vector<256xf32>
    %93 = vector.multi_reduction <add>, %92, %cst_27 [0] : vector<4x256xf32> to vector<256xf32>
    %94 = vector.shape_cast %93 : vector<256xf32> to vector<1x256xf32>
    %cst_28 = arith.constant 0.000000e+00 : f32
    %95 = vector.shape_cast %15 : vector<4x1xf32> to vector<4x1xf32>
    %96 = vector.broadcast %95 : vector<4x1xf32> to vector<4x256xf32>
    %97 = vector.broadcast %cst_28 : f32 to vector<4x256xf32>
    %98 = arith.select %76, %96, %97 : vector<4x256xi1>, vector<4x256xf32>
    %cst_29 = arith.constant dense<0.000000e+00> : vector<256xf32>
    %99 = vector.multi_reduction <add>, %98, %cst_29 [0] : vector<4x256xf32> to vector<256xf32>
    %100 = vector.shape_cast %99 : vector<256xf32> to vector<1x256xf32>
    %cst_30 = arith.constant 0.000000e+00 : f32
    %101 = vector.shape_cast %16 : vector<4x1xf32> to vector<4x1xf32>
    %102 = vector.broadcast %101 : vector<4x1xf32> to vector<4x256xf32>
    %103 = vector.broadcast %cst_30 : f32 to vector<4x256xf32>
    %104 = arith.select %76, %102, %103 : vector<4x256xi1>, vector<4x256xf32>
    %cst_31 = arith.constant dense<0.000000e+00> : vector<256xf32>
    %105 = vector.multi_reduction <add>, %104, %cst_31 [0] : vector<4x256xf32> to vector<256xf32>
    %106 = vector.shape_cast %105 : vector<256xf32> to vector<1x256xf32>
    %cst_32 = arith.constant 5.000000e-01 : f32
    %107 = vector.broadcast %cst_32 : f32 to vector<1x256xf32>
    %108 = arith.cmpf olt, %74, %107 : vector<1x256xf32>
    %cst_33 = arith.constant 0.000000e+00 : f32
    %109 = vector.broadcast %cst_33 : f32 to vector<1x256xf32>
    %110 = arith.select %108, %109, %82 : vector<1x256xi1>, vector<1x256xf32>
    %111 = arith.fptosi %110 : vector<1x256xf32> to vector<1x256xi32>
    %c0_i32_34 = arith.constant 0 : i32
    %112 = vector.broadcast %c0_i32_34 : i32 to vector<1x256xi32>
    %113 = arith.cmpi ne, %111, %112 : vector<1x256xi32>
    %114 = arith.addf %88, %100 : vector<1x256xf32>
    %cst_35 = arith.constant 5.000000e-01 : f32
    %115 = vector.broadcast %cst_35 : f32 to vector<1x256xf32>
    %116 = arith.mulf %114, %115 : vector<1x256xf32>
    %117 = arith.addf %94, %106 : vector<1x256xf32>
    %cst_36 = arith.constant 5.000000e-01 : f32
    %118 = vector.broadcast %cst_36 : f32 to vector<1x256xf32>
    %119 = arith.mulf %117, %118 : vector<1x256xf32>
    %120 = arith.subf %100, %88 : vector<1x256xf32>
    %cst_37 = arith.constant 9.99999996E-13 : f32
    %121 = vector.broadcast %cst_37 : f32 to vector<1x256xf32>
    %122 = arith.maximumf %120, %121 : vector<1x256xf32>
    %123 = arith.subf %106, %94 : vector<1x256xf32>
    %cst_38 = arith.constant 9.99999996E-13 : f32
    %124 = vector.broadcast %cst_38 : f32 to vector<1x256xf32>
    %125 = arith.maximumf %123, %124 : vector<1x256xf32>
    %126 = arith.subf %116, %4 : vector<1x256xf32>
    %127 = arith.mulf %126, %6 : vector<1x256xf32>
    %128 = arith.subf %119, %5 : vector<1x256xf32>
    %129 = arith.mulf %128, %7 : vector<1x256xf32>
    %130 = math.log %122 : vector<1x256xf32>
    %131 = arith.subf %130, %8 : vector<1x256xf32>
    %cst_39 = arith.constant 5.000000e+00 : f32
    %132 = vector.broadcast %cst_39 : f32 to vector<1x256xf32>
    %133 = arith.mulf %131, %132 : vector<1x256xf32>
    %134 = math.log %125 : vector<1x256xf32>
    %135 = arith.subf %134, %9 : vector<1x256xf32>
    %cst_40 = arith.constant 5.000000e+00 : f32
    %136 = vector.broadcast %cst_40 : f32 to vector<1x256xf32>
    %137 = arith.mulf %135, %136 : vector<1x256xf32>
    %138 = tpu.concatenate %127, %129, %133, %137 in 0 : vector<1x256xf32>, vector<1x256xf32>, vector<1x256xf32>, vector<1x256xf32> -> vector<4x256xf32>
    %c0_41 = arith.constant 0 : index
    %c0_42 = arith.constant 0 : index
    %c0_43 = arith.constant 0 : index
    %139 = vector.load %arg3[%c0_41, %c0_42, %c0_43] : memref<1x4x256xf32, #tpu.memory_space<vmem>>, vector<1x4x256xf32>
    %140 = vector.shape_cast %139 : vector<1x4x256xf32> to vector<4x256xf32>
    %141 = arith.subf %140, %138 : vector<4x256xf32>
    %142 = math.absf %141 : vector<4x256xf32>
    %cst_44 = arith.constant 1.000000e+00 : f32
    %143 = vector.broadcast %cst_44 : f32 to vector<4x256xf32>
    %144 = arith.cmpf olt, %142, %143 : vector<4x256xf32>
    %cst_45 = arith.constant 5.000000e-01 : f32
    %145 = vector.broadcast %cst_45 : f32 to vector<4x256xf32>
    %146 = arith.mulf %145, %141 : vector<4x256xf32>
    %147 = arith.mulf %146, %141 : vector<4x256xf32>
    %cst_46 = arith.constant 5.000000e-01 : f32
    %148 = vector.broadcast %cst_46 : f32 to vector<4x256xf32>
    %149 = arith.subf %142, %148 : vector<4x256xf32>
    %150 = arith.select %144, %147, %149 : vector<4x256xi1>, vector<4x256xf32>
    %cst_47 = arith.constant 0.000000e+00 : f32
    %151 = vector.shape_cast %113 : vector<1x256xi1> to vector<1x256xi1>
    %152 = vector.broadcast %151 : vector<1x256xi1> to vector<4x256xi1>
    %153 = vector.broadcast %cst_47 : f32 to vector<4x256xf32>
    %154 = arith.select %152, %150, %153 : vector<4x256xi1>, vector<4x256xf32>
    %c0_48 = arith.constant 0 : index
    %c0_49 = arith.constant 0 : index
    %c0_50 = arith.constant 0 : index
    %155 = vector.load %arg4[%c0_48, %c0_49, %c0_50] : memref<1x8x256xf32, #tpu.memory_space<vmem>>, vector<1x8x256xf32>
    %156 = vector.shape_cast %155 : vector<1x8x256xf32> to vector<8x256xf32>
    %cst_51 = arith.constant dense<0xFF800000> : vector<256xf32>
    %157 = vector.multi_reduction <maximumf>, %156, %cst_51 [0] : vector<8x256xf32> to vector<256xf32>
    %158 = vector.shape_cast %157 : vector<256xf32> to vector<1x256xf32>
    %159 = vector.broadcast %158 : vector<1x256xf32> to vector<8x256xf32>
    %160 = arith.subf %156, %159 : vector<8x256xf32>
    %161 = math.exp %160 : vector<8x256xf32>
    %cst_52 = arith.constant dense<0.000000e+00> : vector<256xf32>
    %162 = vector.multi_reduction <add>, %161, %cst_52 [0] : vector<8x256xf32> to vector<256xf32>
    %163 = vector.shape_cast %162 : vector<256xf32> to vector<1x256xf32>
    %164 = math.log %163 : vector<1x256xf32>
    %165 = vector.broadcast %111 : vector<1x256xi32> to vector<8x256xi32>
    %166 = arith.cmpi eq, %21, %165 : vector<8x256xi32>
    %cst_53 = arith.constant 0.000000e+00 : f32
    %167 = vector.broadcast %cst_53 : f32 to vector<8x256xf32>
    %168 = arith.select %166, %160, %167 : vector<8x256xi1>, vector<8x256xf32>
    %cst_54 = arith.constant dense<0.000000e+00> : vector<256xf32>
    %169 = vector.multi_reduction <add>, %168, %cst_54 [0] : vector<8x256xf32> to vector<256xf32>
    %170 = vector.shape_cast %169 : vector<256xf32> to vector<1x256xf32>
    %171 = arith.subf %164, %170 : vector<1x256xf32>
    %cst_55 = arith.constant 0.000000e+00 : f32
    %172 = vector.broadcast %cst_55 : f32 to vector<1x256xf32>
    %173 = arith.select %113, %171, %172 : vector<1x256xi1>, vector<1x256xf32>
    %cst_56 = arith.constant 0.000000e+00 : f32
    %174 = vector.broadcast %cst_56 : f32 to vector<1x256xf32>
    %175 = arith.select %113, %174, %171 : vector<1x256xi1>, vector<1x256xf32>
    %c0_57 = arith.constant 0 : index
    %c0_58 = arith.constant 0 : index
    %c0_59 = arith.constant 0 : index
    %176 = vector.load %arg5[%c0_57, %c0_58, %c0_59] : memref<1x1x256xf32, #tpu.memory_space<vmem>>, vector<1x1x256xf32>
    %177 = vector.shape_cast %176 : vector<1x1x256xf32> to vector<1x256xf32>
    %178 = vector.shape_cast %175 : vector<1x256xf32> to vector<1x1x256xf32>
    tpu.vector_store %arg5[%c0_57, %c0_58, %c0_59], %178 {strides = array<i32>} : memref<1x1x256xf32, #tpu.memory_space<vmem>>, vector<1x1x256xf32>,
    %179 = arith.extui %113 : vector<1x256xi1> to vector<1x256xi32>
    %180 = arith.sitofp %179 : vector<1x256xi32> to vector<1x256xf32>
    %cst_60 = arith.constant dense<0.000000e+00> : vector<1xf32>
    %181 = vector.multi_reduction <add>, %180, %cst_60 [1] : vector<1x256xf32> to vector<1xf32>
    %182 = vector.shape_cast %181 : vector<1xf32> to vector<1x1xf32>
    %cst_61 = arith.constant dense<0.000000e+00> : vector<1xf32>
    %183 = vector.multi_reduction <add>, %173, %cst_61 [1] : vector<1x256xf32> to vector<1xf32>
    %184 = vector.shape_cast %183 : vector<1xf32> to vector<1x1xf32>
    %cst_62 = arith.constant dense<0.000000e+00> : vector<4xf32>
    %185 = vector.multi_reduction <add>, %154, %cst_62 [1] : vector<4x256xf32> to vector<4xf32>
    %186 = vector.shape_cast %185 : vector<4xf32> to vector<4x1xf32>
    %cst_63 = arith.constant dense<0.000000e+00> : vector<1xf32>
    %187 = vector.multi_reduction <add>, %186, %cst_63 [0] : vector<4x1xf32> to vector<1xf32>
    %188 = vector.shape_cast %187 : vector<1xf32> to vector<1x1xf32>
    %189 = tpu.iota {dimensions = array<i32: 1>} : vector<1x128xi32>
    %c0_i32_64 = arith.constant 0 : i32
    %190 = vector.broadcast %c0_i32_64 : i32 to vector<1x128xi32>
    %191 = arith.cmpi eq, %189, %190 : vector<1x128xi32>
    %cst_65 = arith.constant 0.000000e+00 : f32
    %192 = vector.shape_cast %182 : vector<1x1xf32> to vector<1x1xf32>
    %193 = vector.broadcast %192 : vector<1x1xf32> to vector<1x128xf32>
    %194 = vector.broadcast %cst_65 : f32 to vector<1x128xf32>
    %195 = arith.select %191, %193, %194 : vector<1x128xi1>, vector<1x128xf32>
    %c1_i32 = arith.constant 1 : i32
    %196 = vector.broadcast %c1_i32 : i32 to vector<1x128xi32>
    %197 = arith.cmpi eq, %189, %196 : vector<1x128xi32>
    %cst_66 = arith.constant 0.000000e+00 : f32
    %198 = vector.shape_cast %184 : vector<1x1xf32> to vector<1x1xf32>
    %199 = vector.broadcast %198 : vector<1x1xf32> to vector<1x128xf32>
    %200 = vector.broadcast %cst_66 : f32 to vector<1x128xf32>
    %201 = arith.select %197, %199, %200 : vector<1x128xi1>, vector<1x128xf32>
    %202 = arith.addf %195, %201 : vector<1x128xf32>
    %c2_i32 = arith.constant 2 : i32
    %203 = vector.broadcast %c2_i32 : i32 to vector<1x128xi32>
    %204 = arith.cmpi eq, %189, %203 : vector<1x128xi32>
    %cst_67 = arith.constant 0.000000e+00 : f32
    %205 = vector.shape_cast %188 : vector<1x1xf32> to vector<1x1xf32>
    %206 = vector.broadcast %205 : vector<1x1xf32> to vector<1x128xf32>
    %207 = vector.broadcast %cst_67 : f32 to vector<1x128xf32>
    %208 = arith.select %204, %206, %207 : vector<1x128xi1>, vector<1x128xf32>
    %209 = arith.addf %202, %208 : vector<1x128xf32>
    %c0_68 = arith.constant 0 : index
    %c0_69 = arith.constant 0 : index
    %c0_70 = arith.constant 0 : index
    %210 = vector.load %arg6[%c0_68, %c0_69, %c0_70] : memref<1x1x128xf32, #tpu.memory_space<vmem>>, vector<1x1x128xf32>
    %211 = vector.shape_cast %210 : vector<1x1x128xf32> to vector<1x128xf32>
    %212 = vector.shape_cast %209 : vector<1x128xf32> to vector<1x1x128xf32>
    tpu.vector_store %arg6[%c0_68, %c0_69, %c0_70], %212 {strides = array<i32>} : memref<1x1x128xf32, #tpu.memory_space<vmem>>, vector<1x1x128xf32>,
    return
  }
  func.func @transform_0(%arg0: i32) -> (i32, i32, i32) {
    %c0_i32 = arith.constant 0 : i32
    %c0_i32_0 = arith.constant 0 : i32
    %c0_i32_1 = arith.constant 0 : i32
    return %arg0, %c0_i32, %c0_i32_0 : i32, i32, i32
  }
  func.func @transform_1(%arg0: i32) -> (i32, i32) {
    %c0_i32 = arith.constant 0 : i32
    %c0_i32_0 = arith.constant 0 : i32
    %c0_i32_1 = arith.constant 0 : i32
    return %c0_i32, %c0_i32_0 : i32, i32
  }
  func.func @transform_2(%arg0: i32) -> (i32, i32, i32) {
    %c0_i32 = arith.constant 0 : i32
    %c0_i32_0 = arith.constant 0 : i32
    %c0_i32_1 = arith.constant 0 : i32
    return %arg0, %c0_i32, %c0_i32_0 : i32, i32, i32
  }
  func.func @transform_3(%arg0: i32) -> (i32, i32, i32) {
    %c0_i32 = arith.constant 0 : i32
    %c0_i32_0 = arith.constant 0 : i32
    %c0_i32_1 = arith.constant 0 : i32
    return %arg0, %c0_i32, %c0_i32_0 : i32, i32, i32
  }
  func.func @transform_4(%arg0: i32) -> (i32, i32, i32) {
    %c0_i32 = arith.constant 0 : i32
    %c0_i32_0 = arith.constant 0 : i32
    %c0_i32_1 = arith.constant 0 : i32
    return %arg0, %c0_i32, %c0_i32_0 : i32, i32, i32
  }
  func.func @transform_5(%arg0: i32) -> (i32, i32, i32) {
    %c0_i32 = arith.constant 0 : i32
    %c0_i32_0 = arith.constant 0 : i32
    %c0_i32_1 = arith.constant 0 : i32
    return %arg0, %c0_i32, %c0_i32_0 : i32, i32, i32
  }
}

</mosaic_0001>

<bundles_post_ra>
// kernel: tpu_custom_call.1
= control target key start
LH: loop header
LB: loop body
LE: loop exit
PB: predicated region body
PF: predicated region fallthrough
CT: control target
= control target key end

     0   :  { %s1919_s0 = inlined_call_operand.hbm [shape: f32[2,4,6], index: 0, kind: input, shape index: {}]   ;;  %s1920_s1 = inlined_call_operand.hbm [shape: f32[11,256], index: 1, kind: input, shape index: {}]   ;;  %s1921_s2 = inlined_call_operand.hbm [shape: f32[2,4,256], index: 2, kind: input, shape index: {}]   ;;  %s1922_s3 = inlined_call_operand.hbm [shape: f32[2,8,256], index: 3, kind: input, shape index: {}]   ;;  %s1923_s4 = inlined_call_operand.hbm [shape: f32[2,1,256], index: 4, kind: output, shape index: {0}]   ;;  %s1924_s5 = inlined_call_operand.hbm [shape: f32[2,1,128], index: 5, kind: output, shape index: {1}]  }
   0x1   :  { %1926 = sst [smem:[#allocation19_spill]] %s1919_s0 }
   0x2   :  { %11 = vsyncpa [#allocation3], 0 }
   0x3   :  { %13 = vsyncpa [#allocation3 + $0x1], 0 }
   0x4   :  { %14 = vsyncpa [#allocation6], 0 }
   0x5   :  { %15 = vsyncpa [#allocation4], 0 }
   0x6   :  { %17 = vsyncpa [#allocation4 + $0x1], 0 }
   0x7   :  { %18 = vsyncpa [#allocation11], 0 }
   0x8   :  { %20 = vsyncpa [#allocation11 + $0x1], 0  ;;  %s1471_s18 = smov 0   ;;  %s1473_s19 = smov 0  }
   0x9   :  { %s1475_s20 = smov 0   ;;  %s1477_s21 = smov 0  }
   0xa LB: > { %1927 = sst [smem:[#allocation17_spill]] %s1425_s20  ;;  %s1492_s22 = sadd.s32 4294967295, %s1429_s21   ;;  %s1429_s21 = sphi %s1477_s21, %s1951_s21   ;;  %s1425_s20 = sphi %s1475_s20, %s1948_s20   ;;  %s1421_s19 = sphi %s1473_s19, %s1950_s19   ;;  %s1417_s18 = sphi %s1471_s18, %s1949_s18  }
   0xb   : > { %s1058_s23 = sadd.s32 4294967294, %s1429_s21   ;;  %s1496_s24 = sadd.s32 1, %s1429_s21  }
   0xc   : > { %s33_s25 = sadd.s32 1, %s1425_s20  ;;  %s30_s26 = ssub.s32 %s1429_s21, %s1496_s24 }
   0xd   : > { %p40_p0 = scmp.ne.s32.totalorder %s1425_s20, %s1421_s19  ;;  %p31_p1 = scmp.eq.s32.totalorder %s30_s26, 0 }
   0xe   : > { %p41_p2 = scmp.eq.s32.totalorder %s1429_s21, 0  ;;  %p46_p3 = scmp.ne.s32.totalorder %s1421_s19, %s1417_s18 }
   0xf   : > { %p143_p4 = scmp.eq.s32.totalorder %s1492_s22, 1  ;;  %p149_p7 = scmp.eq.s32.totalorder %s1058_s23, 1 }
  0x10   : > { %s1508_s27 = scalar_select %p31_p1, %s1425_s20, %s33_s25  }
  0x11   : > { %p1510_p5 = por %p41_p2, %p40_p0  ;;  %p1514_p6 = por %p143_p4, %p40_p0 }
  0x12   : > { %1928 = sst [smem:[#allocation18_spill]] %s1508_s27  ;;  %p1131_p9 = scmp.lt.s32.totalorder %s1429_s21, 2 }
  0x13   : > { %p1523_p10 = por %p149_p7, %p46_p3  ;;  %s209_s6 = sand.u32 1, %s1429_s21  }
  0x14   : > { %s1529_s7 = sand.u32 1, %s1425_s20   ;;  %s1063_s9 = sshll.u32 %s1429_s21, 2 }
  0x15   : > { %s1062_s8 = sshll.u32 %s1529_s7, 2  ;;  %s1932_s0 = sld [smem:[#allocation19_spill]] }
  0x16   : > { %s213_s14 = scalar_lea.vmem [#allocation2], %s1062_s8  ;;  %p1538_p11 = pnand %p1131_p9, %p1510_p5 }
  0x17   : > { %s221_s15 = sshll.u32 %s213_s14, 4  ;;  %s1064_s17 = sshll.u32 %s1529_s7, 3  ;;  %s222_s15 = int_to_ptr.vmem [resolvable:$true] %s221_s15 }
  0x18   : > { %s1083_s23 = sshll.u32 %s1429_s21, 3  ;;  %s1547_s10 = scalar_lea.sflag [#allocation3], %s209_s6 }
  0x19   : > { %s237_s27 = scalar_lea.hbm %s1921_s2, %s1083_s23  ;;  %p1207_p13 = pneg %p1538_p11 }
  0x1b   : > { %s217_s12 = scalar_lea.hbm %s1932_s0, %s1063_s9 }
  0x1c   : > { %s219_s13 = sshll.u32 %s217_s12, 4  ;;  %s1210_s12 = scalar_lea.hbm %s1932_s0, 8  ;;  %s220_s13 = int_to_ptr.hbm [resolvable:$true] %s219_s13 }
  0x1d   : > { %s1203_s9 = sshra.s32 %s220_s13, 4  ;;  %s1204_s9 = int_to_ptr.hbm [resolvable:$true] %s1203_s9 }
  0x1e   : > { %s1205_s8 = scalar_lea.hbm %s1204_s9, 4  ;;  %p1211_p2 = scmp.lt.s32.totalorder %s1204_s9, %s1932_s0 }
  0x1f   : > { %p1206_p12 = scmp.ne.s32.totalorder %s1204_s9, %s1205_s8  ;;  %p1212_p4 = scmp.lt.s32.totalorder %s1210_s12, %s1205_s8 }
  0x21   : > { %p1208_p0 = pnand %p1207_p13, %p1206_p12  ;;  %p1213_p5 = por %p1212_p4, %p1211_p2 }
  0x23   : > { %p1209_p1 = pneg %p1208_p0 }
  0x25   : > { %p1214_p7 = pnand %p1213_p5, %p1209_p1 }
  0x27   : > { %1217 = shalt.err (!%p1214_p7)
}
  0x28   : > { %1116 = dma.hbm_to_vmem [thread:$0]  (!%p1538_p11), %s220_s13, 64, %s222_s15, %s1547_s10  }
  0x29   : > { %s239_s6 = sshll.u32 %s237_s27, 4  ;;  %s232_s23 = scalar_lea.vmem [#allocation7], %s1064_s17  ;;  %s240_s6 = int_to_ptr.hbm [resolvable:$true] %s239_s6 }
  0x2a   : > { %s241_s25 = sshll.u32 %s232_s23, 4  ;;  %s1233_s26 = sshra.s32 %s240_s6, 4  ;;  %s242_s25 = int_to_ptr.vmem [resolvable:$true] %s241_s25  ;;  %s1234_s26 = int_to_ptr.hbm [resolvable:$true] %s1233_s26 }
  0x2b   : > { %s1235_s28 = scalar_lea.hbm %s1234_s26, 8  ;;  %s1240_s8 = scalar_lea.hbm %s1921_s2, 16 }
  0x2c   : > { %p1236_p9 = scmp.ne.s32.totalorder %s1234_s26, %s1235_s28  ;;  %p1241_p1 = scmp.lt.s32.totalorder %s1234_s26, %s1921_s2 }
  0x2d   : > { %p1242_p2 = scmp.lt.s32.totalorder %s1240_s8, %s1235_s28 }
  0x2e   : > { %p1238_p12 = pnand %p1236_p9, %p1207_p13 }
  0x2f   : > { %p1243_p4 = por %p1242_p2, %p1241_p1 }
  0x30   : > { %p1239_p0 = pneg %p1238_p12 }
  0x32   : > { %p1244_p5 = pnand %p1243_p4, %p1239_p0 }
  0x34   : > { %1247 = shalt.err (!%p1244_p5)
}
  0x35   : > { %1119 = dma.hbm_to_vmem [thread:$0]  (!%p1538_p11), %s240_s6, 128, %s242_s25, %s1547_s10  }
  0x36   : > { %p47_p7 = scmp.eq.s32.totalorder %s1492_s22, 0  ;;  %p1059_p9 = scmp.ge.s32.totalorder %s1429_s21, 1 }
  0x37   : > { %p182_p12 = scmp.lt.s32.totalorder %s1429_s21, 3  ;;  %s193_s15 = sshll.u32 %s1920_s1, 4  ;;  %s194_s15 = int_to_ptr.hbm [resolvable:$true] %s193_s15 }
  0x38   : > { %p1586_p0 = por %p47_p7, %p46_p3  ;;  %s1431_s6 = smov [#allocation5]  }
  0x39   : > { %p1590_p1 = pnand %p1059_p9, %p182_p12  ;;  %s195_s23 = sshll.u32 %s1431_s6, 4  ;;  %s196_s23 = int_to_ptr.vmem [resolvable:$true] %s195_s23 }
  0x3a   : > { %s1067_s25 = sshll.u32 %s1529_s7, 4  ;;  %s1084_s26 = sshll.u32 %s1429_s21, 4 }
  0x3b   : > { %p1109_p2 = pneg %p1590_p1  ;;  %s252_s28 = scalar_lea.vmem [#allocation8], %s1067_s25 }
  0x3c   : > { %s261_s20 = sshll.u32 %s252_s28, 4  ;;  %s257_s11 = scalar_lea.hbm %s1922_s3, %s1084_s26  ;;  %s262_s20 = int_to_ptr.vmem [resolvable:$true] %s261_s20 }
  0x3d   : > { %p1110_p4 = pnand %p1109_p2, %p47_p7  ;;  %s1432_s12 = smov 256  }
  0x3e   : > { %s1433_s27 = smov 16   ;;  %s259_s13 = sshll.u32 %s257_s11, 4  ;;  %s260_s13 = int_to_ptr.hbm [resolvable:$true] %s259_s13 }
  0x3f   : > { %1112 = dma.hbm_to_vmem [thread:$0]  (!%p1110_p4), %s194_s15, 512, %s196_s23, [#allocation6], %s1432_s12, %s1432_s12, %s1433_s27  }
  0x40   : > { %s1293_s6 = sshra.s32 %s260_s13, 4  ;;  %s1300_s28 = scalar_lea.hbm %s1922_s3, 32  ;;  %s1294_s6 = int_to_ptr.hbm [resolvable:$true] %s1293_s6 }
  0x41   : > { %s1295_s0 = scalar_lea.hbm %s1294_s6, 16  ;;  %p1301_p12 = scmp.lt.s32.totalorder %s1294_s6, %s1922_s3 }
  0x42   : > { %p1296_p3 = scmp.ne.s32.totalorder %s1294_s6, %s1295_s0  ;;  %p1302_p2 = scmp.lt.s32.totalorder %s1300_s28, %s1295_s0 }
  0x44   : > { %p1298_p5 = pnand %p1296_p3, %p1207_p13  ;;  %p1303_p4 = por %p1302_p2, %p1301_p12 }
  0x46   : > { %p1299_p9 = pneg %p1298_p5 }
  0x48   : > { %p1304_p8 = pnand %p1303_p4, %p1299_p9 }
  0x4a   : > { %1307 = shalt.err (!%p1304_p8)
}
  0x4b   : > { %1122 = dma.hbm_to_vmem [thread:$0]  (!%p1538_p11), %s260_s13, 256, %s262_s20, %s1547_s10  }
  0x4c   : > { %270 = sbr.rel (%p1590_p1) target bundleno = 840 (0x348), region = 36  ;;  %s272_s15 = sand.u32 (!%p1590_p1), 1, %s1492_s22  }
  0x4d   : > { %s1619_s23 = sand.u32 (!%p1590_p1), 1, %s1421_s19   ;;  %s273_s11 = scalar_lea.sflag (!%p1590_p1), [#allocation3], %s272_s15 }
  0x4e   : > { %s1071_s8 = sshll.u32 (!%p1590_p1), %s1619_s23, 2 }
  0x4f   : > { %s276_s0 = scalar_lea.vmem (!%p1590_p1), [#allocation2], %s1071_s8 }
  0x51   : > { %1396 = dma.done.wait (%p1586_p0), %s273_s11, 64  }
  0x52   : > { %1398 = vsyncadd (%p1586_p0), %s273_s11, 4294967232 }
  0x53   : > { %1400 = dma.done.wait (%p47_p7), [#allocation6], 512  }
  0x54   : > { %1402 = vsyncadd (%p47_p7), [#allocation6], 4294966784  ;;  %s1073_s16 = sshll.u32 %s1619_s23, 3 }
  0x55   : > { %s1631_s10 = scalar_lea.vmem [#allocation7], %s1073_s16 }
  0x56   : > { %1404 = dma.done.wait (%p1586_p0), %s273_s11, 384  }
  0x57   : > { %1406 = vsyncadd (%p1586_p0), %s273_s11, 4294966912  ;;  %v1434_v0 = vmov 3   ;;  %v1435_v1 = vmov 2   ;;  %v1436_v2 = vmov 5   ;;  %v1637_v3 = vld [vmem:[%s276_s0] sm:$0xf] }
  0x58   : > { %1178 = vset.pattern.permute.xlu1 %v1434_v0  ;;  %1176 = vset.pattern.permute.xlu0 %v1435_v1  ;;  %v1437_v4 = vmov 1   ;;  %v1438_v5 = vmov 0   ;;  %v349_v8 = vld [vmem:[#allocation5 + $0x3] ss:$8 sm:$0x3]  ;;  %vm470_vm8 = vcmask 1043456  }
  0x59   : > { %1180 = vset.pattern.permute.xlu2 %v1436_v2  ;;  %403 = vperm.xlu1 %1178, %v1637_v3   ;;  %v347_v9 = vld [vmem:[#allocation5 + $0x2] ss:$8 sm:$0x3]  ;;  %v345_v10 = vld [vmem:[#allocation5 + $0x1] ss:$8 sm:$0x3] }
  0x5a   : > { %377 = vperm.xlu0 %1176, %v1637_v3   ;;  %431 = vperm.xlu2 %1180, %v1637_v3   ;;  %v343_v11 = vld [vmem:[#allocation5] ss:$8 sm:$0x3]  ;;  %v398_v12 = vperm.slane %v349_v8, 0  ;;  %v399_v13 = vperm.slane %v349_v8, 1  ;;  %v371_v14 = vperm.slane %v347_v9, 0 }
  0x5b   : > { %v372_v15 = vperm.slane %v347_v9, 1  ;;  %v363_v16 = vld [vmem:[#allocation5 + $0x12] ss:$8 sm:$0x3]  ;;  %v409_v17 = vperm.slane %v345_v10, 0  ;;  %v410_v18 = vperm.slane %v345_v10, 1 }
  0x5c   : > { %v383_v19 = vperm.slane %v343_v11, 0  ;;  %v384_v20 = vperm.slane %v343_v11, 1  ;;  %v426_v21 = vperm.slane %v363_v16, 0  ;;  %v427_v22 = vperm.slane %v363_v16, 1  ;;  %s1074_s17 = sshll.u32 %s1619_s23, 4  ;;  %s1075_s20 = sshll.u32 %s1619_s23, 1 }
  0x5d   : > { %s301_s14 = scalar_lea.vmem [#allocation8], %s1074_s17  ;;  %s336_s12 = scalar_lea.vmem [#allocation9], %s1075_s20 }
  0x5e   : > { %s1080_s27 = sshll.u32 %s1492_s22, 1  ;;  %s894_s25 = sshll.u32 %s336_s12, 4  ;;  %s895_s25 = int_to_ptr.vmem [resolvable:$true] %s894_s25 }
  0x5f   : > { %s892_s7 = scalar_lea.hbm %s1923_s4, %s1080_s27  ;;  %s878_s9 = scalar_lea.sflag [#allocation4], %s1619_s23 }
  0x60   : > { %s896_s28 = sshll.u32 %s892_s7, 4  ;;  %s1343_s0 = scalar_lea.hbm %s1923_s4, 4  ;;  %s897_s28 = int_to_ptr.hbm [resolvable:$true] %s896_s28 }
  0x61   : > { %1179 = vset.pattern.permute.xlu1 %v1437_v4  ;;  %s1337_s26 = sshra.s32 %s897_s28, 4  ;;  %s1338_s26 = int_to_ptr.hbm [resolvable:$true] %s1337_s26 }
  0x62   : > { %1177 = vset.pattern.permute.xlu0 %v1438_v5  ;;  %414 = vperm.xlu1 %1179, %v1637_v3   ;;  %s1339_s15 = scalar_lea.hbm %s1338_s26, 2  ;;  %p1344_p7 = scmp.lt.s32.totalorder %s1338_s26, %s1923_s4 }
  0x63   : > { %388 = vperm.xlu0 %1177, %v1637_v3   ;;  %p1340_p8 = scmp.ne.s32.totalorder %s1338_s26, %s1339_s15  ;;  %p1345_p0 = scmp.lt.s32.totalorder %s1343_s0, %s1339_s15 }
  0x65   : > { %p1341_p11 = pnand %p1340_p8, %p1514_p6  ;;  %p1346_p1 = por %p1345_p0, %p1344_p7 }
  0x67   : > { %p1342_p13 = pneg %p1341_p11 }
  0x69   : > { %p1347_p3 = pnand %p1346_p1, %p1342_p13 }
  0xb4   : > { %v432_v33 = vpop.permute.xlu2 %431 }
  0xb5   : > { %v434_v38 = vadd.f32 %v432_v33, %v426_v21  ;;  %v435_v39 = vadd.f32 %v432_v33, %v427_v22 }
  0xcb   : > { %v1644_v6 = vpop.permute.xlu1 %403 }
  0xcc   : > { %v1646_v7 = vpop.permute.xlu0 %377  ;;  %v406_v23 = vmin.f32 %v398_v12, %v1644_v6  ;;  %v407_v24 = vmin.f32 %v399_v13, %v1644_v6 }
  0xcd   : > { %v380_v25 = vmin.f32 %v371_v14, %v1646_v7  ;;  %v381_v26 = vmin.f32 %v372_v15, %v1646_v7  ;;  %v365_v14 = vlaneseq }
  0xcf   : > { %v1663_v15 = vand.u32 127, %v365_v14 }
  0xd1   : > { %v1666_v16 = vadd.s32 128, %v1663_v15 }
  0xd4   : > { %v1652_v27 = vpop.permute.xlu1 %414 }
  0xd5   : > { %v1654_v28 = vpop.permute.xlu0 %388  ;;  %v417_v29 = vmax.f32 %v409_v17, %v1652_v27  ;;  %v418_v30 = vmax.f32 %v410_v18, %v1652_v27 }
  0xd6   : > { %v391_v31 = vmax.f32 %v383_v19, %v1654_v28  ;;  %v392_v32 = vmax.f32 %v384_v20, %v1654_v28 }
  0xd7   : > { %v419_v34 = vsub.f32 %v406_v23, %v417_v29  ;;  %v420_v35 = vsub.f32 %v407_v24, %v418_v30 }
  0xd8   : > { %v393_v36 = vsub.f32 %v380_v25, %v391_v31  ;;  %v394_v37 = vsub.f32 %v381_v26, %v392_v32  ;;  %v1439_v25 = vmov 4  }
  0xd9   : > { %v421_v42 = vmax.f32 %v419_v34, 0.0  ;;  %v422_v43 = vmax.f32 %v420_v35, 0.0  ;;  %1181 = vset.pattern.permute.xlu2 %v1439_v25  ;;  %1182 = vset.pattern.permute.xlu0 %v1439_v25  ;;  %v1701_v25 = vld [vmem:[#allocation5 + $0x4] ss:$8 sm:$0x3] }
  0xda   : > { %v395_v40 = vmax.f32 %v393_v36, 0.0  ;;  %v396_v41 = vmax.f32 %v394_v37, 0.0 }
  0xdc   : > { %v423_v44 = vmul.f32 %v421_v42, %v395_v40  ;;  %v424_v45 = vmul.f32 %v422_v43, %v396_v41  ;;  %v1678_v43 = vshrl.u32 %v365_v14, 7 }
  0xde   : > { %v436_v46 = vsub.f32 %v434_v38, %v423_v44  ;;  %v437_v47 = vsub.f32 %v435_v39, %v424_v45 }
  0xe0   : > { %v438_v48 = vmax.f32 %v436_v46, 1e-12  ;;  %v439_v49 = vmax.f32 %v437_v47, 1e-12 }
  0xe2   : > { %1183 = vrcp.f32 %v438_v48  ;;  %v451_v55 = vand.u32 2147483648, %v438_v48  ;;  %v449_v58 = vand.u32 2147483647, %v438_v48  ;;  %v466_v59 = vand.u32 2147483648, %v439_v49 }
  0xe3   : > { %1185 = vrcp.f32 %v439_v49  ;;  %v464_v61 = vand.u32 2147483647, %v439_v49  ;;  %vm445_vm2 = vweird.f32 %v438_v48  ;;  %vm460_vm4 = vweird.f32 %v439_v49 }
  0xe4   : > { %v452_v63 = vor.u32 1.1754944e-38, %v451_v55  ;;  %vm450_vm5 = vcmp.eq.f32.partialorder %v449_v58, 8.507059e+37  ;;  %v467_v2 = vor.u32 1.1754944e-38, %v466_v59  ;;  %v1687_v59 = vld [vmem:[%s301_s14] sm:$0xff] }
  0xe5   : > { %vm465_vm7 = vcmp.eq.f32.partialorder %v464_v61, 8.507059e+37 }
  0xe8   : > { %v1184_v50 = vpop.eup %1183 }
  0xe9   : > { %v1186_v51 = vpop.eup %1185  ;;  %v441_v52 = vmul.f32 %v1184_v50, %v438_v48  ;;  %vm446_vm0 = vweird.f32 %v1184_v50 }
  0xea   : > { %v456_v53 = vmul.f32 %v1186_v51, %v439_v49  ;;  %vm461_vm1 = vweird.f32 %v1186_v51  ;;  %vm447_vm3 = vmor %vm445_vm2, %vm446_vm0 }
  0xeb   : > { %v442_v54 = vsub.f32 1.0, %v441_v52  ;;  %vm462_vm6 = vmor %vm460_vm4, %vm461_vm1 }
  0xec   : > { %v457_v56 = vsub.f32 1.0, %v456_v53 }
  0xed   : > { %v443_v57 = vmul.f32 %v1184_v50, %v442_v54 }
  0xee   : > { %v458_v60 = vmul.f32 %v1186_v51, %v457_v56 }
  0xef   : > { %v444_v62 = vadd.f32 %v1184_v50, %v443_v57 }
  0xf0   : > { %v459_v0 = vadd.f32 %v1186_v51, %v458_v60 }
  0xf1   : > { %v448_v1 = vsel %vm447_vm3, %v1184_v50, %v444_v62 }
  0xf2   : > { %v453_v4 = vsel %vm450_vm5, %v452_v63, %v448_v1  ;;  %v463_v5 = vsel %vm462_vm6, %v1186_v51, %v459_v0  ;;  %v782_v0 = vrot.slane %v1687_v59, 4 }
  0xf3   : > { %v454_v8 = vmul.f32 %v453_v4, %v423_v44  ;;  %v468_v9 = vsel %vm465_vm7, %v467_v2, %v463_v5  ;;  %v1696_v4 = vld [vmem:[%s301_s14 + $0x8] sm:$0xff] }
  0xf4   : > { %v469_v10 = vmul.f32 %v468_v9, %v424_v45 }
  0xf5   : > { %v471_v11 = vsel %vm470_vm8, %v454_v8, -inf }
  0xf6   : > { %v478_v12 = vsel %vm470_vm8, %v469_v10, -inf  ;;  %v472_v32 = vrot.slane %v471_v11, 4 }
  0xf7   : > { %v509_v13 = vmax.f32 %v471_v11, %v478_v12  ;;  %v479_v33 = vrot.slane %v478_v12, 4 }
  0xf8   : > { %v473_v34 = vmax.f32 %v471_v11, %v472_v32  ;;  %v783_v11 = vmax.f32 %v1687_v59, %v782_v0 }
  0xf9   : > { %510 = vmax.xlane.f32.xlu2 %v509_v13  ;;  %v480_v35 = vmax.f32 %v478_v12, %v479_v33  ;;  %v788_v12 = vrot.slane %v1696_v4, 4 }
  0xfa   : > { %v474_v36 = vrot.slane %v473_v34, 2 }
  0xfb   : > { %v481_v37 = vrot.slane %v480_v35, 2 }
  0xfc   : > { %v475_v38 = vmax.f32 %v473_v34, %v474_v36  ;;  %v675_v36 = vperm.slane %v1701_v25, 0 }
  0xfd   : > { %v482_v39 = vmax.f32 %v480_v35, %v481_v37  ;;  %v676_v37 = vperm.slane %v1701_v25, 1 }
  0xfe   : > { %v476_v40 = vrot.slane %v475_v38, 1 }
  0xff   : > { %v483_v41 = vrot.slane %v482_v39, 1 }
 0x100   : > { %v1673_v42 = vmax.f32 %v475_v38, %v476_v40 }
 0x102   : > { %vm485_vm13 = vcmp.eq.f32.partialorder %v454_v8, %v1673_v42 }
 0x103   : > { %v487_v44 = vsel %vm485_vm13, %v1678_v43, 4 }
 0x104   : > { %v489_v46 = vsel %vm470_vm8, %v487_v44, 2147483647 }
 0x105   : > { %v490_v48 = vrot.slane %v489_v46, 4 }
 0x107   : > { %vm491_vm15 = vcmp.lt.s32.totalorder %v489_v46, %v490_v48 }
 0x108   : > { %v492_v50 = vsel %vm491_vm15, %v489_v46, %v490_v48 }
 0x109   : > { %v493_v53 = vrot.slane %v492_v50, 2 }
 0x10b   : > { %vm494_vm1 = vcmp.lt.s32.totalorder %v492_v50, %v493_v53 }
 0x10c   : > { %v495_v60 = vsel %vm494_vm1, %v492_v50, %v493_v53 }
 0x111   : > { %567 = vperm.xlu2 %1181, %v1637_v3   ;;  %v1675_v3 = vmax.f32 %v482_v39, %v483_v41 }
 0x113   : > { %vm486_vm14 = vcmp.eq.f32.partialorder %v469_v10, %v1675_v3 }
 0x114   : > { %v488_v45 = vsel %vm486_vm14, %v1678_v43, 4 }
 0x115   : > { %v499_v47 = vsel %vm470_vm8, %v488_v45, 2147483647 }
 0x116   : > { %v500_v49 = vrot.slane %v499_v47, 4 }
 0x118   : > { %vm501_vm0 = vcmp.lt.s32.totalorder %v499_v47, %v500_v49 }
 0x119   : > { %v502_v51 = vsel %vm501_vm0, %v499_v47, %v500_v49 }
 0x11a   : > { %v503_v54 = vrot.slane %v502_v51, 2 }
 0x11c   : > { %vm504_vm2 = vcmp.lt.s32.totalorder %v502_v51, %v503_v54 }
 0x11d   : > { %v505_v63 = vsel %vm504_vm2, %v502_v51, %v503_v54 }
 0x11e   : > { %v506_v9 = vrot.slane %v505_v63, 1 }
 0x120   : > { %vm507_vm7 = vcmp.lt.s32.totalorder %v505_v63, %v506_v9 }
 0x16c   : > { %v511_v17 = vpop.xlane.xlu2 %510 }
 0x16d   : > { %vm512_vm9 = vcmp.eq.f32.partialorder %v454_v8, %v511_v17  ;;  %vm513_vm10 = vcmp.eq.f32.partialorder %v469_v10, %v511_v17  ;;  %v496_v10 = vrot.slane %v495_v60, 1 }
 0x16e   : > { %v514_v18 = vsel %vm512_vm9, %v1663_v15, 256  ;;  %v515_v19 = vsel %vm513_vm10, %v1666_v16, 256 }
 0x16f   : > { %v516_v20 = vsel %vm470_vm8, %v514_v18, 2147483647  ;;  %v517_v21 = vsel %vm470_vm8, %v515_v19, 2147483647  ;;  %vm497_vm9 = vcmp.lt.s32.totalorder %v495_v60, %v496_v10  ;;  %v784_v19 = vrot.slane %v783_v11, 2 }
 0x170   : > { %vm518_vm11 = vcmp.lt.s32.totalorder %v516_v20, %v517_v21 }
 0x171   : > { %v519_v22 = vsel %vm518_vm11, %v516_v20, %v517_v21  ;;  %v789_v20 = vmax.f32 %v1696_v4, %v788_v12  ;;  %v785_v32 = vmax.f32 %v783_v11, %v784_v19 }
 0x172   : > { %v521_v23 = vshra.s32 %v519_v22, 16  ;;  %v520_v26 = vand.u32 65535, %v519_v22 }
 0x173   : > { %v790_v33 = vrot.slane %v789_v20, 2  ;;  %v786_v48 = vrot.slane %v785_v32, 1 }
 0x174   : > { %v523_v24 = vcvt.s32.f32 %v521_v23  ;;  %v522_v30 = vcvt.s32.f32 %v520_v26  ;;  %v1703_v26 = vld [vmem:[#allocation5 + $0x5] ss:$8 sm:$0x3]  ;;  %v568_v54 = vpop.permute.xlu2 %567 }
 0x175   : > { %v689_v38 = vperm.slane %v1703_v26, 0  ;;  %v690_v39 = vperm.slane %v1703_v26, 1  ;;  %v791_v49 = vmax.f32 %v789_v20, %v790_v33 }
 0x176   : > { %524 = vmin.xlane.f32.xlu1 %v523_v24 }
 0x1e9   : > { %v525_v29 = vpop.xlane.xlu1 %524 }
 0x1ea   : > { %vm526_vm12 = vcmp.eq.f32.partialorder %v523_v24, %v525_v29  ;;  %v531_v52 = vcvt.f32.s32 %v525_v29  ;;  %v508_v29 = vsel %vm507_vm7, %v505_v63, %v506_v9 }
 0x1eb   : > { %v527_v31 = vsel %vm526_vm12, %v522_v30, inf  ;;  %v498_v30 = vsel %vm497_vm9, %v495_v60, %v496_v10 }
 0x1ec   : > { %528 = vmin.xlane.f32.xlu0 %v527_v31  ;;  %v532_v56 = vshll.u32 %v531_v52, 16  ;;  %v1705_v31 = vld [vmem:[#allocation5 + $0x6] ss:$8 sm:$0x3] }
 0x1ed   : > { %v682_v41 = vperm.slane %v1705_v31, 0  ;;  %v683_v44 = vperm.slane %v1705_v31, 1  ;;  %v755_v31 = vld [vmem:[%s1631_s10] sm:$0xff] }
 0x25f   : > { %v529_v55 = vpop.xlane.xlu0 %528 }
 0x260   : > { %v530_v57 = vcvt.f32.s32 %v529_v55 }
 0x262   : > { %v533_v58 = vadd.s32 %v532_v56, %v530_v57 }
 0x264   : > { %vm534_vm3 = vcmp.eq.s32.totalorder %v1663_v15, %v533_v58  ;;  %vm535_vm4 = vcmp.eq.s32.totalorder %v1666_v16, %v533_v58 }
 0x265   : > { %v536_v61 = vsel %vm534_vm3, %v1678_v43, 4294967295  ;;  %v537_v62 = vsel %vm535_vm4, %v1678_v43, 4294967295 }
 0x266   : > { %v538_v1 = vsel %vm470_vm8, %v536_v61, 2147483648  ;;  %v548_v2 = vsel %vm470_vm8, %v537_v62, 2147483648 }
 0x267   : > { %v539_v5 = vrot.slane %v538_v1, 4  ;;  %v549_v8 = vrot.slane %v548_v2, 4 }
 0x269   : > { %vm540_vm5 = vcmp.gt.s32.totalorder %v538_v1, %v539_v5  ;;  %vm550_vm6 = vcmp.gt.s32.totalorder %v548_v2, %v549_v8 }
 0x26a   : > { %v541_v13 = vsel %vm540_vm5, %v538_v1, %v539_v5  ;;  %v551_v16 = vsel %vm550_vm6, %v548_v2, %v549_v8  ;;  %v787_v2 = vmax.f32 %v785_v32, %v786_v48  ;;  %v792_v5 = vrot.slane %v791_v49, 1 }
 0x26b   : > { %v542_v17 = vrot.slane %v541_v13, 2  ;;  %v552_v18 = vrot.slane %v551_v16, 2 }
 0x26d   : > { %vm543_vm10 = vcmp.gt.s32.totalorder %v541_v13, %v542_v17  ;;  %vm553_vm11 = vcmp.gt.s32.totalorder %v551_v16, %v552_v18 }
 0x26e   : > { %v544_v21 = vsel %vm543_vm10, %v541_v13, %v542_v17  ;;  %v554_v22 = vsel %vm553_vm11, %v551_v16, %v552_v18  ;;  %vm746_vm10 = vcmask 1040384  }
 0x26f   : > { %v545_v23 = vrot.slane %v544_v21, 1  ;;  %v555_v24 = vrot.slane %v554_v22, 1 }
 0x271   : > { %vm546_vm12 = vcmp.gt.s32.totalorder %v544_v21, %v545_v23  ;;  %vm556_vm13 = vcmp.gt.s32.totalorder %v554_v22, %v555_v24 }
 0x272   : > { %v1707_v34 = vsel %vm546_vm12, %v544_v21, %v545_v23  ;;  %v1709_v35 = vsel %vm556_vm13, %v554_v22, %v555_v24  ;;  %vm749_vm12 = vcmask 1041408   ;;  %vm752_vm13 = vcmask 1042432  }
 0x273   : > { %vm558_vm14 = vcmp.ge.s32.totalorder %v1707_v34, 0  ;;  %vm559_vm15 = vcmp.ge.s32.totalorder %v1709_v35, 0 }
 0x274   : > { %v561_v40 = vsel %vm559_vm15, %v1709_v35, %v508_v29  ;;  %v560_v45 = vsel %vm558_vm14, %v1707_v34, %v498_v30 }
 0x275   : > { %vm1726_vm0 = vcmp.eq.s32.totalorder %v1678_v43, %v561_v40  ;;  %vm1731_vm1 = vcmp.eq.s32.totalorder %v1678_v43, %v560_v45  ;;  %v1765_v45 = vld [vmem:[#allocation5 + $0x7] ss:$8 sm:$0x3] }
 0x276   : > { %v587_v50 = vsel %vm1726_vm0, %v1654_v28, 0.0  ;;  %v603_v51 = vsel %vm1726_vm0, %v1652_v27, 0.0  ;;  %v619_v52 = vsel %vm1726_vm0, %v1646_v7, 0.0  ;;  %v635_v53 = vsel %vm1726_vm0, %v1644_v6, 0.0 }
 0x277   : > { %v595_v55 = vsel %vm470_vm8, %v587_v50, 0.0  ;;  %v611_v56 = vsel %vm470_vm8, %v603_v51, 0.0  ;;  %v627_v57 = vsel %vm470_vm8, %v619_v52, 0.0  ;;  %v643_v58 = vsel %vm470_vm8, %v635_v53, 0.0 }
 0x278   : > { %v596_v60 = vrot.slane %v595_v55, 4  ;;  %v612_v61 = vrot.slane %v611_v56, 4  ;;  %v628_v62 = vrot.slane %v627_v57, 4  ;;  %v644_v63 = vrot.slane %v643_v58, 4 }
 0x279   : > { %v570_v0 = vsel %vm1731_vm1, %v568_v54, 0.0  ;;  %v571_v1 = vsel %vm1726_vm0, %v568_v54, 0.0  ;;  %v586_v16 = vsel %vm1731_vm1, %v1654_v28, 0.0  ;;  %v602_v17 = vsel %vm1731_vm1, %v1652_v27, 0.0 }
 0x27a   : > { %v597_v8 = vadd.f32 %v596_v60, %v595_v55  ;;  %v613_v9 = vadd.f32 %v612_v61, %v611_v56  ;;  %v629_v10 = vadd.f32 %v628_v62, %v627_v57  ;;  %v645_v11 = vadd.f32 %v644_v63, %v643_v58  ;;  %v1767_v58 = vld [vmem:[#allocation5 + $0x10] ss:$8 sm:$0x3] }
 0x27b   : > { %v572_v12 = vsel %vm470_vm8, %v570_v0, 0.0  ;;  %v579_v13 = vsel %vm470_vm8, %v571_v1, 0.0  ;;  %v588_v24 = vsel %vm470_vm8, %v586_v16, 0.0  ;;  %v604_v29 = vsel %vm470_vm8, %v602_v17, 0.0 }
 0x27c   : > { %v598_v18 = vrot.slane %v597_v8, 2  ;;  %v614_v19 = vrot.slane %v613_v9, 2  ;;  %v630_v20 = vrot.slane %v629_v10, 2  ;;  %v646_v21 = vrot.slane %v645_v11, 2 }
 0x27d   : > { %v573_v22 = vrot.slane %v572_v12, 4  ;;  %v580_v23 = vrot.slane %v579_v13, 4  ;;  %v589_v48 = vrot.slane %v588_v24, 4  ;;  %v605_v27 = vrot.slane %v604_v29, 4 }
 0x27e   : > { %v599_v30 = vadd.f32 %v598_v18, %v597_v8  ;;  %v615_v32 = vadd.f32 %v614_v19, %v613_v9  ;;  %v631_v33 = vadd.f32 %v630_v20, %v629_v10  ;;  %v647_v40 = vadd.f32 %v646_v21, %v645_v11 }
 0x27f   : > { %v574_v28 = vadd.f32 %v573_v22, %v572_v12  ;;  %v581_v46 = vadd.f32 %v580_v23, %v579_v13  ;;  %v590_v56 = vadd.f32 %v589_v48, %v588_v24  ;;  %v606_v57 = vadd.f32 %v605_v27, %v604_v29 }
 0x280   : > { %v600_v50 = vrot.slane %v599_v30, 1  ;;  %v616_v51 = vrot.slane %v615_v32, 1  ;;  %v632_v52 = vrot.slane %v631_v33, 1  ;;  %v648_v53 = vrot.slane %v647_v40, 1 }
 0x281   : > { %v575_v54 = vrot.slane %v574_v28, 2  ;;  %v582_v55 = vrot.slane %v581_v46, 2  ;;  %v696_v0 = vperm.slane %v1765_v45, 0  ;;  %v697_v1 = vperm.slane %v1765_v45, 1 }
 0x282   : > { %v601_v60 = vadd.f32 %v600_v50, %v599_v30  ;;  %v617_v61 = vadd.f32 %v616_v51, %v615_v32  ;;  %v633_v62 = vadd.f32 %v632_v52, %v631_v33  ;;  %v649_v63 = vadd.f32 %v648_v53, %v647_v40 }
 0x283   : > { %v576_v8 = vadd.f32 %v575_v54, %v574_v28  ;;  %v583_v9 = vadd.f32 %v582_v55, %v581_v46  ;;  %v793_v12 = vmax.f32 %v791_v49, %v792_v5  ;;  %v1772_v13 = vsub.f32 %v1687_v59, %v787_v2 }
 0x284   : > { %v667_v10 = vsub.f32 %v633_v62, %v601_v60  ;;  %v671_v11 = vsub.f32 %v649_v63, %v617_v61  ;;  %v707_v16 = vperm.slane %v1767_v58, 0  ;;  %v591_v19 = vrot.slane %v590_v56, 2 }
 0x285   : > { %v577_v17 = vrot.slane %v576_v8, 1  ;;  %v584_v18 = vrot.slane %v583_v9, 1  ;;  %v563_v20 = vsel %vm559_vm15, 1.0, %v1675_v3  ;;  %v562_v22 = vsel %vm558_vm14, 1.0, %v1673_v42 }
 0x286   : > { %v669_v21 = vmax.f32 %v667_v10, 1e-12  ;;  %v607_v23 = vrot.slane %v606_v57, 2  ;;  %v673_v24 = vmax.f32 %v671_v11, 1e-12  ;;  %v708_v49 = vperm.slane %v1767_v58, 1 }
 0x287   : > { %v578_v59 = vadd.f32 %v577_v17, %v576_v8  ;;  %v585_v2 = vadd.f32 %v584_v18, %v583_v9  ;;  %v618_v5 = vsel %vm1731_vm1, %v1646_v7, 0.0  ;;  %v1786_v29 = vsub.f32 %v1696_v4, %v793_v12 }
 0x288   : > { %1187 = vlog2.f32 %v669_v21  ;;  %v796_v3 = vmul.f32 1.442695, %v1772_v13  ;;  %vm651_vm2 = vcmp.lt.f32.partialorder %v563_v20, 0.5  ;;  %v592_v35 = vadd.f32 %v591_v19, %v590_v56 }
 0x289   : > { %v620_v42 = vsel %vm470_vm8, %v618_v5, 0.0  ;;  %vm650_vm3 = vcmp.lt.f32.partialorder %v562_v22, 0.5  ;;  %v663_v34 = vadd.f32 %v649_v63, %v617_v61  ;;  %v608_v30 = vadd.f32 %v607_v23, %v606_v57  ;;  %v1795_v61 = vld [vmem:[#allocation5 + $0x11] ss:$8 sm:$0x3] }
 0x28a   : > { %v621_v32 = vrot.slane %v620_v42, 4  ;;  %v634_v33 = vsel %vm1731_vm1, %v1644_v6, 0.0  ;;  %1189 = vlog2.f32 %v673_v24  ;;  %v652_v40 = vsel %vm650_vm3, 0.0, %v578_v59 }
 0x28b   : > { %v636_v7 = vsel %vm470_vm8, %v634_v33, 0.0  ;;  %v653_v4 = vsel %vm651_vm2, 0.0, %v585_v2  ;;  %vm1085_vm4 = vcmp.lt.s32.totalorder %v652_v40, 0  ;;  %v798_v48 = vmul.f32 1.442695, %v1786_v29 }
 0x28c   : > { %v622_v28 = vadd.f32 %v621_v32, %v620_v42  ;;  %v637_v46 = vrot.slane %v636_v7, 4  ;;  %v593_v27 = vrot.slane %v592_v35, 1  ;;  %v1086_v50 = vceil.f32 %v652_v40 }
 0x28d   : > { %v1087_v51 = vfloor.f32 %v652_v40  ;;  %v1091_v52 = vceil.f32 %v653_v4  ;;  %vm1090_vm5 = vcmp.lt.s32.totalorder %v653_v4, 0  ;;  %v1092_v47 = vfloor.f32 %v653_v4 }
 0x28e   : > { %v1188_v53 = vpop.eup %1187  ;;  %v623_v54 = vrot.slane %v622_v28, 2  ;;  %v638_v55 = vadd.f32 %v637_v46, %v636_v7  ;;  %v665_v6 = vmul.f32 0.5, %v663_v34  ;;  %v609_v56 = vrot.slane %v608_v30, 1 }
 0x28f   : > { %v1088_v57 = vsel %vm1085_vm4, %v1086_v50, %v1087_v51  ;;  %1191 = vpow2.f32 %v796_v3  ;;  %v659_v63 = vadd.f32 %v633_v62, %v601_v60  ;;  %v705_v12 = vmul.f32 0.6931472, %v1188_v53 }
 0x290   : > { %v624_v8 = vadd.f32 %v623_v54, %v622_v28  ;;  %v639_v9 = vrot.slane %v638_v55, 2  ;;  %v1089_v10 = vcvt.f32.s32 %v1088_v57  ;;  %v1190_v11 = vpop.eup %1189  ;;  %v594_v17 = vadd.f32 %v593_v27, %v592_v35 }
 0x291   : > { %v1093_v18 = vsel %vm1090_vm5, %v1091_v52, %v1092_v47  ;;  %1193 = vpow2.f32 %v798_v48  ;;  %v694_v22 = vsub.f32 %v665_v6, %v690_v39  ;;  %v721_v23 = vperm.slane %v1795_v61, 1 }
 0x292   : > { %v625_v19 = vrot.slane %v624_v8, 1  ;;  %v640_v20 = vadd.f32 %v639_v9, %v638_v55  ;;  %v1094_v21 = vcvt.f32.s32 %v1093_v18  ;;  %v610_v24 = vadd.f32 %v609_v56, %v608_v30 }
 0x293   : > { %vm1800_vm6 = vcmp.ne.s32.totalorder %v1089_v10, 0  ;;  %v718_v60 = vmul.f32 0.6931472, %v1190_v11  ;;  %v712_v35 = vsub.f32 %v705_v12, %v708_v49  ;;  %vm1809_vm9 = vcmp.eq.s32.totalorder %v1678_v43, %v1089_v10 }
 0x294   : > { %v626_v62 = vadd.f32 %v625_v19, %v624_v8  ;;  %v641_v2 = vrot.slane %v640_v20, 1  ;;  %vm1804_vm7 = vcmp.ne.s32.totalorder %v1094_v21, 0  ;;  %v1440_v39 = vmov 0.0  }
 0x295   : > { %v1192_v3 = vpop.eup %1191  ;;  %v1077_v34 = vsel %vm1800_vm6, 1.0, %v1440_v39  ;;  %v1078_v30 = vsel %vm1804_vm7, 1.0, %v1440_v39  ;;  %v661_v32 = vmul.f32 0.5, %v659_v63  ;;  %v720_v33 = vperm.slane %v1795_v61, 0 }
 0x296   : > { %v642_v7 = vadd.f32 %v641_v2, %v640_v20  ;;  %v666_v40 = vsub.f32 %v626_v62, %v594_v17  ;;  %v701_v49 = vmul.f32 %v697_v1, %v694_v22  ;;  %vm817_vm11 = vcmp.eq.s32.totalorder %v1678_v43, %v1094_v21 }
 0x297   : > { %v1194_v4 = vpop.eup %1193  ;;  %v850_v28 = vadd.f32 %v1078_v30, %v1077_v34  ;;  %v800_v46 = vrot.slane %v1192_v3, 4  ;;  %v725_v48 = vsub.f32 %v718_v60, %v721_v23  ;;  %v818_v51 = vsel %vm1809_vm9, %v1772_v13, 0.0 }
 0x298   : > { %v662_v27 = vadd.f32 %v642_v7, %v610_v24  ;;  %v668_v50 = vmax.f32 %v666_v40, 1e-12  ;;  %v714_v52 = vmul.f32 5.0, %v712_v35  ;;  %v670_v53 = vsub.f32 %v642_v7, %v610_v24 }
 0x299   : > { %851 = vadd.xlane.f32.xlu0 %v850_v28  ;;  %v801_v54 = vadd.f32 %v1192_v3, %v800_v46  ;;  %v806_v55 = vrot.slane %v1194_v4, 4  ;;  %v658_v47 = vadd.f32 %v626_v62, %v594_v17  ;;  %v819_v1 = vsel %vm817_vm11, %v1786_v29, 0.0 }
 0x29a   : > { %v664_v6 = vmul.f32 0.5, %v662_v27  ;;  %1195 = vlog2.f32 %v668_v50  ;;  %v672_v43 = vmax.f32 %v670_v53, 1e-12  ;;  %v820_v63 = vrot.slane %v818_v51, 4 }
 0x29b   : > { %v802_v56 = vrot.slane %v801_v54, 2  ;;  %v807_v57 = vadd.f32 %v1194_v4, %v806_v55  ;;  %v680_v8 = vsub.f32 %v661_v32, %v676_v37  ;;  %v826_v9 = vrot.slane %v819_v1, 4 }
 0x29c   : > { %v693_v13 = vsub.f32 %v664_v6, %v689_v38  ;;  %1197 = vlog2.f32 %v672_v43  ;;  %v821_v12 = vadd.f32 %v820_v63, %v818_v51  ;;  %v727_v17 = vmul.f32 5.0, %v725_v48 }
 0x29d   : > { %v803_v10 = vadd.f32 %v802_v56, %v801_v54  ;;  %v808_v11 = vrot.slane %v807_v57, 2  ;;  %v731_v18 = vrot.slane %v701_v49, 7  ;;  %v660_v19 = vmul.f32 0.5, %v658_v47 }
 0x29e   : > { %v827_v29 = vadd.f32 %v826_v9, %v819_v1  ;;  %v737_v20 = vrot.slane %v714_v52, 6  ;;  %v822_v23 = vrot.slane %v821_v12, 2  ;;  %v687_v37 = vmul.f32 %v683_v44, %v680_v8 }
 0x29f   : > { %v804_v21 = vrot.slane %v803_v10, 1  ;;  %v809_v22 = vadd.f32 %v808_v11, %v807_v57  ;;  %v700_v26 = vmul.f32 %v696_v0, %v693_v13  ;;  %v743_v35 = vrot.slane %v727_v17, 5 }
 0x2a0   : > { %v1196_v24 = vpop.eup %1195  ;;  %v828_v38 = vrot.slane %v827_v29, 2  ;;  %v823_v3 = vadd.f32 %v822_v23, %v821_v12  ;;  %v748_v42 = vsel %vm746_vm10, %v687_v37, %v731_v18  ;;  %v679_v39 = vsub.f32 %v660_v19, %v675_v36 }
 0x2a1   : > { %v703_v60 = vmul.f32 0.6931472, %v1196_v24  ;;  %v805_v62 = vadd.f32 %v804_v21, %v803_v10  ;;  %v810_v2 = vrot.slane %v809_v22, 1  ;;  %v751_v32 = vsel %vm749_vm12, %v748_v42, %v737_v20 }
 0x2a2   : > { %v829_v34 = vadd.f32 %v828_v38, %v827_v29  ;;  %v1198_v30 = vpop.eup %1197  ;;  %v730_v7 = vrot.slane %v700_v26, 7  ;;  %v824_v40 = vrot.slane %v823_v3, 1  ;;  %v754_v49 = vsel %vm752_vm13, %v751_v32, %v743_v35 }
 0x2a3   : > { %v711_v44 = vsub.f32 %v703_v60, %v707_v16  ;;  %v811_v45 = vadd.f32 %v810_v2, %v809_v22  ;;  %1199 = vlog2.f32 %v805_v62  ;;  %v716_v0 = vmul.f32 0.6931472, %v1198_v30 }
 0x2a4   : > { %v686_v25 = vmul.f32 %v682_v41, %v679_v39  ;;  %v830_v28 = vrot.slane %v829_v34, 1  ;;  %v825_v48 = vadd.f32 %v824_v40, %v823_v3  ;;  %v758_v50 = vrot.slane %v754_v49, 4 }
 0x2a5   : > { %v713_v4 = vmul.f32 5.0, %v711_v44  ;;  %1201 = vlog2.f32 %v811_v45  ;;  %v724_v36 = vsub.f32 %v716_v0, %v720_v33  ;;  %vm845_vm14 = vcmp.lt.s32.totalorder %v365_v14, 256 }
 0x2a6   : > { %v747_v16 = vsel %vm746_vm10, %v686_v25, %v730_v7  ;;  %v831_v54 = vadd.f32 %v830_v28, %v829_v34 }
 0x2a7   : > { %v736_v46 = vrot.slane %v713_v4, 6  ;;  %v726_v58 = vmul.f32 5.0, %v724_v36 }
 0x2a9   : > { %v1200_v27 = vpop.eup %1199  ;;  %v750_v51 = vsel %vm749_vm12, %v747_v16, %v736_v46  ;;  %v742_v52 = vrot.slane %v726_v58, 5 }
 0x2aa   : > { %v813_v53 = vmul.f32 0.6931472, %v1200_v27 }
 0x2ab   : > { %v1202_v55 = vpop.eup %1201  ;;  %v753_v41 = vsel %vm752_vm13, %v750_v51, %v742_v52 }
 0x2ac   : > { %v815_v61 = vmul.f32 0.6931472, %v1202_v55  ;;  %v832_v33 = vsub.f32 %v813_v53, %v825_v48  ;;  %v759_v47 = vsel %vm470_vm8, %v753_v41, %v758_v50 }
 0x2ad   : > { %v761_v6 = vsub.f32 %v755_v31, %v759_v47 }
 0x2ae   : > { %v833_v1 = vsub.f32 %v815_v61, %v831_v54  ;;  %v834_v43 = vsel %vm1800_vm6, %v832_v33, 0.0  ;;  %v836_v12 = vsel %vm1800_vm6, 0.0, %v832_v33 }
 0x2af   : > { %v762_v56 = vand.u32 2147483647, %v761_v6  ;;  %v764_v57 = vmul.f32 0.5, %v761_v6 }
 0x2b0   : > { %v835_v63 = vsel %vm1804_vm7, %v833_v1, 0.0  ;;  %v837_v8 = vsel %vm1804_vm7, 0.0, %v833_v1 }
 0x2b1   : > { %v840_v13 = vrot.slane %v837_v8, 7  ;;  %v853_v9 = vadd.f32 %v835_v63, %v834_v43  ;;  %v765_v10 = vmul.f32 %v764_v57, %v761_v6  ;;  %v1076_v11 = vadd.f32 -0.5, %v762_v56 }
 0x2b2   : > { %vm763_vm15 = vcmp.lt.f32.partialorder %v762_v56, 1.0 }
 0x2b3   : > { %v841_v17 = vsel %vm746_vm10, %v836_v12, %v840_v13  ;;  %v767_v18 = vsel %vm763_vm15, %v765_v10, %v1076_v11 }
 0x2b4   : > { %847 = vst.msk [vmem:[%s336_s12] sm:$0x3] %vm845_vm14, %v841_v17 }
 0x2b5   : > { %773 = vst [vmem:[#allocation1] ss:$2 sm:$0xff] %v767_v18 }
 0x2bc   : > { %v774_v19 = vld.sshfl [vmem:[#allocation1] sm:$0xff pattern:$0x75316420]  ;;  %v775_v29 = vld.sshfl [vmem:[#allocation1 + $0x8] sm:$0xff pattern:$0x75316420] }
 0x2bd   : > { %v778_v20 = vsel %vm1800_vm6, %v774_v19, 0.0  ;;  %v779_v14 = vsel %vm1804_vm7, %v775_v29, 0.0 }
 0x2be   : > { %v856_v21 = vsel %vm470_vm8, %v778_v20, 0.0  ;;  %v857_v22 = vsel %vm470_vm8, %v779_v14, 0.0 }
 0x2bf   : > { %v858_v23 = vadd.f32 %v857_v22, %v856_v21 }
 0x2c1   : > { %859 = vadd.xlane.f32.xlu1 %v858_v23 }
 0x2c2   : > { %1350 = shalt.err (!%p1347_p3)
}
 0x2c3   : > { %1105 = dma.vmem_to_hbm [thread:$0]  (%p1514_p6), %s895_s25, 32, %s897_s28, %s878_s9   ;;  %vm870_vm0 = vcmp.eq.s32.totalorder %v1663_v15, 1  ;;  %vm868_vm1 = vcmp.eq.s32.totalorder %v1663_v15, 0  ;;  %vm873_vm2 = vcmp.eq.s32.totalorder %v1663_v15, 2 }
 0x2c4   : > { %s905_s20 = scalar_lea.hbm %s1924_s5, %s1492_s22  ;;  %s342_s12 = scalar_lea.vmem [#allocation10], %s1619_s23 }
 0x2c5   : > { %s907_s27 = sshll.u32 %s342_s12, 4  ;;  %s909_s13 = sshll.u32 %s905_s20, 4  ;;  %s908_s27 = int_to_ptr.vmem [resolvable:$true] %s907_s27  ;;  %s910_s13 = int_to_ptr.hbm [resolvable:$true] %s909_s13 }
 0x2c6   : > { %s883_s6 = scalar_lea.sflag [#allocation11], %s1619_s23  ;;  %s1365_s7 = sshra.s32 %s910_s13, 4  ;;  %s1366_s7 = int_to_ptr.hbm [resolvable:$true] %s1365_s7 }
 0x2c7   : > { %s1367_s22 = scalar_lea.hbm %s1366_s7, 1  ;;  %s1371_s9 = scalar_lea.hbm %s1924_s5, 2 }
 0x2c8   : > { %p1368_p5 = scmp.ne.s32.totalorder %s1366_s7, %s1367_s22  ;;  %p1372_p2 = scmp.lt.s32.totalorder %s1366_s7, %s1924_s5 }
 0x2c9   : > { %854 = vadd.xlane.f32.xlu1 %v853_v9  ;;  %p1373_p4 = scmp.lt.s32.totalorder %s1371_s9, %s1367_s22 }
 0x2ca   : > { %p1369_p9 = pnand %p1368_p5, %p1514_p6 }
 0x2cb   : > { %p1374_p8 = por %p1373_p4, %p1372_p2 }
 0x2cc   : > { %p1370_p12 = pneg %p1369_p9 }
 0x2ce   : > { %p1375_p11 = pnand %p1374_p8, %p1370_p12 }
 0x30c   : > { %v852_v62 = vpop.xlane.xlu0 %851 }
 0x30d   : > { %v869_v35 = vsel %vm868_vm1, %v852_v62, 0.0 }
 0x334   : > { %v860_v59 = vpop.xlane.xlu1 %859 }
 0x335   : > { %v861_v5 = vsel %vm470_vm8, %v860_v59, 0.0 }
 0x336   : > { %v862_v24 = vrot.slane %v861_v5, 4 }
 0x338   : > { %v863_v37 = vadd.f32 %v862_v24, %v861_v5 }
 0x33a   : > { %v864_v26 = vrot.slane %v863_v37, 2 }
 0x33c   : > { %v865_v38 = vadd.f32 %v864_v26, %v863_v37  ;;  %v855_v60 = vpop.xlane.xlu1 %854 }
 0x33d   : > { %v871_v3 = vsel %vm870_vm0, %v855_v60, 0.0 }
 0x33e   : > { %v866_v2 = vrot.slane %v865_v38, 1  ;;  %v872_v39 = vadd.f32 %v871_v3, %v869_v35 }
 0x340   : > { %v867_v42 = vadd.f32 %v866_v2, %v865_v38 }
 0x342   : > { %v874_v34 = vsel %vm873_vm2, %v867_v42, 0.0 }
 0x343   : > { %v875_v30 = vadd.f32 %v874_v34, %v872_v39 }
 0x345   : > { %876 = vst [vmem:[%s342_s12] sm:$0x1] %v875_v30 }
 0x346   : > { %1378 = shalt.err (!%p1375_p11)
}
 0x347   : > { %1106 = dma.vmem_to_hbm [thread:$0]  (%p1514_p6), %s908_s27, 16, %s910_s13, %s883_s6  }
 0x348 PF: > { %s921_s23 = sand.u32 1, %s1417_s18   ;;  %p1946_p13 = scmp.ge.s32.totalorder %s1429_s21, 2 }
 0x349   : > { %s922_s8 = scalar_lea.sflag [#allocation4], %s921_s23 }
 0x34a   : > { %p1124_p7 = pnand %p1946_p13, %p1523_p10 }
 0x34c   : > { %p1125_p0 = pneg %p1124_p7 }
 0x34e   : > { %1408 = dma.done.wait (%p1125_p0), %s922_s8, 32  }
 0x34f   : > { %1410 = vsyncadd (%p1125_p0), %s922_s8, 4294967264  ;;  %s932_s11 = scalar_lea.sflag [#allocation11], %s921_s23 }
 0x350   : > { %1412 = dma.done.wait (%p1125_p0), %s932_s11, 16  }
 0x351   : > { %1414 = vsyncadd (%p1125_p0), %s932_s11, 4294967280  ;;  %s1947_s0 = sld [smem:[#allocation17_spill]]  ;;  %p23_p6 = scmp.ge.s32.totalorder %s1496_s24, 4  }
 0x352   : > { %s1948_s20 = sld [smem:[#allocation18_spill]]  ;;  %s1949_s18 = smov %s1421_s19 }
 0x353   : > { %s1951_s21 = smov %s1496_s24  ;;  %25 = sbr.rel (!%p23_p6) target bundleno = 10 (0xa), region = 134 }
 0x357   : > { %s1950_s19 = smov %s1947_s0 }
 0x358   :  { %937 = vsyncpa [#allocation3], 1 }
 0x359   :  { %939 = vsyncpa [#allocation3 + $0x1], 1 }
 0x35a   :  { %940 = vsyncpa [#allocation6], 1 }
 0x35b   :  { %941 = vsyncpa [#allocation4], 1 }
 0x35c   :  { %943 = vsyncpa [#allocation4 + $0x1], 1 }
 0x35d   :  { %944 = vsyncpa [#allocation11], 1 }
 0x35e   :  { %946 = vsyncpa [#allocation11 + $0x1], 1 }

</bundles_post_ra>
